<compile_context>
chip_gen: v6e
topology: v6e:2x2x1
jax: 0.10.0
libtpu: 0.0.40
codegen_flags: <defaults>
</compile_context>

<pallas_src>
import jax
import jax.numpy as jnp
from jax.experimental import pallas as pl
from jax.experimental.pallas import tpu as pltpu

# Logical sizes
IN_F, HID_F, LAT_F = 784, 400, 20
# Lane-padded sizes (multiples of 128)
IN_P, HID_P, LAT_P = 896, 512, 128
MLV_P = 2 * LAT_P  # fused mu|logvar output width (256)


def _round_up(x, m):
    return ((x + m - 1) // m) * m


def make_vae_kernel(sub_rows, num_sub):
    """Kernel over one (block_b, ...) batch tile, processed in `num_sub` row
    sub-blocks (static unroll) to overlap EUP/VPU tails with MXU matmuls."""

    def vae_forward_kernel(
        x_ref, eps_ref,
        w1_ref, b1_ref,
        w2f_ref, b2f_ref,     # fused fc21|fc22
        w3_ref, b3_ref,
        w4_ref, b4_ref,
        recon_ref, mulv_ref,
    ):
        # Hoist resident weight/bias loads out of the sub-block loop.
        w1 = w1_ref[...]; b1 = b1_ref[...]
        w2f = w2f_ref[...]; b2f = b2f_ref[...]
        w3 = w3_ref[...]; b3 = b3_ref[...]
        w4 = w4_ref[...]; b4 = b4_ref[...]

        for s in range(num_sub):                       # static unroll
            rs = pl.ds(s * sub_rows, sub_rows)         # sublane-aligned row slice
            x = x_ref[rs, :]                           # (sub_rows, 896) bf16

            # encode: h1 = relu(fc1(x)) -- bf16 operands, f32 accumulate/elementwise
            h1 = jnp.dot(x, w1, preferred_element_type=jnp.float32) + b1
            h1 = jnp.maximum(h1, 0.0)

            # fused fc21|fc22: mu in lanes [0,128), logvar in lanes [128,256)
            ml = jnp.dot(h1.astype(jnp.bfloat16), w2f,
                         preferred_element_type=jnp.float32) + b2f
            mu = ml[:, :LAT_P]
            logvar = ml[:, LAT_P:]

            # reparameterize (training mode): z = mu + eps * exp(0.5 * logvar)  [f32]
            z = mu + eps_ref[rs, :] * jnp.exp(0.5 * logvar)

            # decode: h3 = relu(fc3(z)); recon = tanh(fc4(h3))   (tanh as written)
            h3 = jnp.dot(z.astype(jnp.bfloat16), w3,
                         preferred_element_type=jnp.float32) + b3
            h3 = jnp.maximum(h3, 0.0)
            recon = jnp.tanh(
                jnp.dot(h3.astype(jnp.bfloat16), w4,
                        preferred_element_type=jnp.float32) + b4
            )

            recon_ref[rs, :] = recon.astype(jnp.bfloat16)   # lane-dense bf16 store
            mulv_ref[rs, :] = ml                            # lane-dense f32 store

    return vae_forward_kernel


def _pad2(a, rows, cols):
    r, c = a.shape
    return jnp.pad(a, ((0, rows - r), (0, cols - c)))


def pack_params(params):
    """Pad to lane-multiples, fuse fc21|fc22, cast weights to bf16 (biases f32).
    Keep the result device-resident and reuse it across calls (one-time cost)."""
    (w1, b1, w21, b21, w22, b22, w3, b3, w4, b4) = params

    w1p = _pad2(w1, IN_P, HID_P).astype(jnp.bfloat16)            # (896, 512)
    b1p = _pad2(b1, 1, HID_P).astype(jnp.float32)                # (1, 512)

    w2f = jnp.zeros((HID_P, MLV_P), jnp.float32)                 # (512, 256)
    w2f = w2f.at[:HID_F, :LAT_F].set(w21)
    w2f = w2f.at[:HID_F, LAT_P:LAT_P + LAT_F].set(w22)
    w2f = w2f.astype(jnp.bfloat16)
    b2f = jnp.zeros((1, MLV_P), jnp.float32)
    b2f = b2f.at[:, :LAT_F].set(b21)
    b2f = b2f.at[:, LAT_P:LAT_P + LAT_F].set(b22)

    w3p = _pad2(w3, LAT_P, HID_P).astype(jnp.bfloat16)           # (128, 512)
    b3p = _pad2(b3, 1, HID_P).astype(jnp.float32)                # (1, 512)
    w4p = _pad2(w4, HID_P, IN_P).astype(jnp.bfloat16)            # (512, 896)
    b4p = _pad2(b4, 1, IN_P).astype(jnp.float32)                 # (1, 896)

    return (w1p, b1p, w2f, b2f, w3p, b3p, w4p, b4p)


_WMAP = lambda i: (0, 0)   # weights/biases stay VMEM-resident across batch tiles


def _const_spec(shape):
    """BlockSpec for grid-invariant operands; single-buffered when supported."""
    if hasattr(pl, "Buffered"):
        try:
            return pl.BlockSpec(shape, _WMAP, pipeline_mode=pl.Buffered(1))
        except TypeError:
            pass
    return pl.BlockSpec(shape, _WMAP)


def vae_forward(x_nchw, packed_params, eps):
    """x_nchw: (B, 1, 28, 28) f32.
    Returns (recon_padded (B, 896) bf16 -- lanes [784:] are exactly 0,
             mu (B, 20) f32, logvar (B, 20) f32)."""
    x = x_nchw.reshape(-1, IN_F)                                  # glue: view(-1, 784)
    B = x.shape[0]

    # Batch tiling: >=2 grid steps whenever possible (v7x megacore), tile <= 512
    # rows, padded to a sublane multiple of 8.
    block_b = min(512, _round_up(pl.cdiv(B, 2), 8))
    B_pad = _round_up(B, block_b)
    grid = (B_pad // block_b,)

    # In-kernel sub-blocking (overlap EUP/VPU with MXU) only for large tiles
    # where the sub-blocks stay sublane-aligned (>= 32 rows each).
    num_sub = 2 if (block_b >= 64 and block_b % 16 == 0) else 1
    sub_rows = block_b // num_sub

    # bf16 x stream (cast before pad so the pad copy is also half-width).
    x_p = jnp.pad(x.astype(jnp.bfloat16),
                  ((0, B_pad - B), (0, IN_P - IN_F)))             # (B_pad, 896) bf16
    eps_p = jnp.pad(eps.astype(jnp.float32),
                    ((0, B_pad - B), (0, LAT_P - LAT_F)))         # (B_pad, 128) f32

    (w1p, b1p, w2f, b2f, w3p, b3p, w4p, b4p) = packed_params

    in_specs = [
        pl.BlockSpec((block_b, IN_P), lambda i: (i, 0)),          # x (bf16)
        pl.BlockSpec((block_b, LAT_P), lambda i: (i, 0)),         # eps (f32)
        _const_spec((IN_P, HID_P)),                               # w1
        _const_spec((1, HID_P)),                                  # b1
        _const_spec((HID_P, MLV_P)),                              # w2f (fc21|fc22)
        _const_spec((1, MLV_P)),                                  # b2f
        _const_spec((LAT_P, HID_P)),                              # w3
        _const_spec((1, HID_P)),                                  # b3
        _const_spec((HID_P, IN_P)),                               # w4
        _const_spec((1, IN_P)),                                   # b4
    ]
    out_specs = (
        pl.BlockSpec((block_b, IN_P), lambda i: (i, 0)),          # recon (bf16, padded)
        pl.BlockSpec((block_b, MLV_P), lambda i: (i, 0)),         # mu|logvar (f32)
    )
    out_shape = (
        jax.ShapeDtypeStruct((B_pad, IN_P), jnp.bfloat16),
        jax.ShapeDtypeStruct((B_pad, MLV_P), jnp.float32),
    )

    weight_elems = IN_P * HID_P + HID_P * MLV_P + LAT_P * HID_P + HID_P * IN_P
    bias_elems = HID_P + MLV_P + HID_P + IN_P
    cost = pl.CostEstimate(
        flops=2 * B_pad * weight_elems,
        transcendentals=B_pad * (LAT_P + IN_P),
        bytes_accessed=(2 * weight_elems + 4 * bias_elems
                        + 2 * B_pad * IN_P                        # x (bf16)
                        + 4 * B_pad * LAT_P                       # eps (f32)
                        + 2 * B_pad * IN_P                        # recon (bf16)
                        + 4 * B_pad * MLV_P),                     # mu|logvar (f32)
    )

    recon_p, mulv_p = pl.pallas_call(
        make_vae_kernel(sub_rows, num_sub),
        grid=grid,
        in_specs=in_specs,
        out_specs=out_specs,
        out_shape=out_shape,
        compiler_params=pltpu.CompilerParams(
            dimension_semantics=("parallel",),
            vmem_limit_bytes=48 << 20,    # safe on v7x (64 MiB/TC), ample on v5e/v6e
        ),
        cost_estimate=cost,
    )(x_p, eps_p, w1p, b1p, w2f, b2f, w3p, b3p, w4p, b4p)

    # Slice only the batch dim; keep recon lane-padded (padded lanes are exactly 0)
    # so no extra full-size lane-slice copy is materialized outside the kernel.
    recon_padded = recon_p[:B]
    mu = mulv_p[:B, :LAT_F]
    logvar = mulv_p[:B, LAT_P:LAT_P + LAT_F]
    return recon_padded, mu, logvar


def init_params(key):
    """Deterministic init mimicking PyTorch nn.Linear default (U[-1/sqrt(fan_in), +]).
    Weights stored transposed as (in_features, out_features); biases as (1, out)."""
    def linear(key, fan_in, fan_out):
        kw, kb = jax.random.split(key)
        bound = 1.0 / jnp.sqrt(fan_in)
        w = jax.random.uniform(kw, (fan_in, fan_out), jnp.float32, -bound, bound)
        b = jax.random.uniform(kb, (1, fan_out), jnp.float32, -bound, bound)
        return w, b

    keys = jax.random.split(key, 5)
    w1, b1 = linear(keys[0], IN_F, HID_F)     # fc1
    w21, b21 = linear(keys[1], HID_F, LAT_F)  # fc21
    w22, b22 = linear(keys[2], HID_F, LAT_F)  # fc22
    w3, b3 = linear(keys[3], LAT_F, HID_F)    # fc3
    w4, b4 = linear(keys[4], HID_F, IN_F)     # fc4
    return (w1, b1, w21, b21, w22, b22, w3, b3, w4, b4)


def reference_forward(x_nchw, params, eps):
    """Pure-JAX f32 reference (matches the PyTorch module's forward, tanh decode)."""
    (w1, b1, w21, b21, w22, b22, w3, b3, w4, b4) = params
    x = x_nchw.reshape(-1, IN_F).astype(jnp.float32)
    h1 = jnp.maximum(x @ w1 + b1, 0.0)
    mu = h1 @ w21 + b21
    logvar = h1 @ w22 + b22
    z = mu + eps * jnp.exp(0.5 * logvar)
    h3 = jnp.maximum(z @ w3 + b3, 0.0)
    recon = jnp.tanh(h3 @ w4 + b4)
    return recon, mu, logvar


if __name__ == "__main__":
    key = jax.random.PRNGKey(0)
    k_x, k_eps, k_p = jax.random.split(key, 3)

    params = init_params(k_p)
    packed = pack_params(params)
    packed = jax.block_until_ready(packed)   # weights device-resident, reused per call

    # B=8  -> single grid step, no sub-blocking (latency path)
    # B=128 -> grid=(2,) ("parallel" -> both v7x TCs), 2 in-kernel row sub-blocks
    for B in (8, 128):
        kx = jax.random.fold_in(k_x, B)
        ke = jax.random.fold_in(k_eps, B)
        x = jax.random.uniform(kx, (B, 1, 28, 28), jnp.float32)   # MNIST-like NCHW
        eps = jax.random.normal(ke, (B, LAT_F), jnp.float32)      # reparam noise

        recon_p, mu, logvar = vae_forward(x, packed, eps)
        jax.block_until_ready((recon_p, mu, logvar))

        # sanity check vs pure-JAX f32 reference (bf16 MXU operands/streams -> loose tol)
        r_ref, m_ref, lv_ref = reference_forward(x, params, eps)
        assert recon_p.shape == (B, IN_P) and recon_p.dtype == jnp.bfloat16
        assert mu.shape == (B, LAT_F) and logvar.shape == (B, LAT_F)
        assert bool(jnp.all(recon_p[:, IN_F:] == 0))              # padded lanes exactly 0
        recon = recon_p[:, :IN_F].astype(jnp.float32)             # test-only lane slice
        assert jnp.allclose(mu, m_ref, atol=3e-2, rtol=3e-2)
        assert jnp.allclose(logvar, lv_ref, atol=3e-2, rtol=3e-2)
        assert jnp.allclose(recon, r_ref, atol=3e-2, rtol=3e-2)

    print("KERNEL_OK")
</pallas_src>

<mosaic_0001>
module attributes {stable_mosaic.version = 11 : i64} {
  func.func @vae_forward_kernel(%arg0: i32, %arg1: memref<8x896xbf16, #tpu.memory_space<vmem>>, %arg2: memref<8x128xf32, #tpu.memory_space<vmem>>, %arg3: memref<896x512xbf16, #tpu.memory_space<vmem>>, %arg4: memref<1x512xf32, #tpu.memory_space<vmem>>, %arg5: memref<512x256xbf16, #tpu.memory_space<vmem>>, %arg6: memref<1x256xf32, #tpu.memory_space<vmem>>, %arg7: memref<128x512xbf16, #tpu.memory_space<vmem>>, %arg8: memref<1x512xf32, #tpu.memory_space<vmem>>, %arg9: memref<512x896xbf16, #tpu.memory_space<vmem>>, %arg10: memref<1x896xf32, #tpu.memory_space<vmem>>, %arg11: memref<8x896xbf16, #tpu.memory_space<vmem>>, %arg12: memref<8x256xf32, #tpu.memory_space<vmem>>) attributes {dimension_semantics = [#tpu.dimension_semantics<parallel>], iteration_bounds = array<i64: 1>, scalar_prefetch = 0 : i64, scratch_operands = 0 : i64, tpu.core_type = #tpu.core_type<tc>, window_params = [{transform_indices = @transform_0, window_bounds = array<i64: 8, 896>}, {transform_indices = @transform_1, window_bounds = array<i64: 8, 128>}, {pipeline_mode = #tpu.pipeline_mode<synchronous>, transform_indices = @transform_2, window_bounds = array<i64: 896, 512>}, {pipeline_mode = #tpu.pipeline_mode<synchronous>, transform_indices = @transform_3, window_bounds = array<i64: 1, 512>}, {pipeline_mode = #tpu.pipeline_mode<synchronous>, transform_indices = @transform_4, window_bounds = array<i64: 512, 256>}, {pipeline_mode = #tpu.pipeline_mode<synchronous>, transform_indices = @transform_5, window_bounds = array<i64: 1, 256>}, {pipeline_mode = #tpu.pipeline_mode<synchronous>, transform_indices = @transform_6, window_bounds = array<i64: 128, 512>}, {pipeline_mode = #tpu.pipeline_mode<synchronous>, transform_indices = @transform_7, window_bounds = array<i64: 1, 512>}, {pipeline_mode = #tpu.pipeline_mode<synchronous>, transform_indices = @transform_8, window_bounds = array<i64: 512, 896>}, {pipeline_mode = #tpu.pipeline_mode<synchronous>, transform_indices = @transform_9, window_bounds = array<i64: 1, 896>}, {transform_indices = @transform_10, window_bounds = array<i64: 8, 896>}, {transform_indices = @transform_11, window_bounds = array<i64: 8, 256>}]} {
    %c0 = arith.constant 0 : index
    %c0_0 = arith.constant 0 : index
    %0 = vector.load %arg3[%c0, %c0_0] : memref<896x512xbf16, #tpu.memory_space<vmem>>, vector<896x512xbf16>
    %c0_1 = arith.constant 0 : index
    %c0_2 = arith.constant 0 : index
    %1 = vector.load %arg4[%c0_1, %c0_2] : memref<1x512xf32, #tpu.memory_space<vmem>>, vector<1x512xf32>
    %c0_3 = arith.constant 0 : index
    %c0_4 = arith.constant 0 : index
    %2 = vector.load %arg5[%c0_3, %c0_4] : memref<512x256xbf16, #tpu.memory_space<vmem>>, vector<512x256xbf16>
    %c0_5 = arith.constant 0 : index
    %c0_6 = arith.constant 0 : index
    %3 = vector.load %arg6[%c0_5, %c0_6] : memref<1x256xf32, #tpu.memory_space<vmem>>, vector<1x256xf32>
    %c0_7 = arith.constant 0 : index
    %c0_8 = arith.constant 0 : index
    %4 = vector.load %arg7[%c0_7, %c0_8] : memref<128x512xbf16, #tpu.memory_space<vmem>>, vector<128x512xbf16>
    %c0_9 = arith.constant 0 : index
    %c0_10 = arith.constant 0 : index
    %5 = vector.load %arg8[%c0_9, %c0_10] : memref<1x512xf32, #tpu.memory_space<vmem>>, vector<1x512xf32>
    %c0_11 = arith.constant 0 : index
    %c0_12 = arith.constant 0 : index
    %6 = vector.load %arg9[%c0_11, %c0_12] : memref<512x896xbf16, #tpu.memory_space<vmem>>, vector<512x896xbf16>
    %c0_13 = arith.constant 0 : index
    %c0_14 = arith.constant 0 : index
    %7 = vector.load %arg10[%c0_13, %c0_14] : memref<1x896xf32, #tpu.memory_space<vmem>>, vector<1x896xf32>
    %c0_15 = arith.constant 0 : index
    %c0_16 = arith.constant 0 : index
    %8 = vector.load %arg1[%c0_15, %c0_16] : memref<8x896xbf16, #tpu.memory_space<vmem>>, vector<8x896xbf16>
    %cst = arith.constant dense<0.000000e+00> : vector<8x512xf32>
    %9 = tpu.matmul %8, %0, %cst {dimension_numbers = #tpu.dot_dimension_numbers<[1], [0], [0], [1], [0, 0, 1, 1], [], []>} : vector<8x896xbf16>, vector<896x512xbf16>, vector<8x512xf32> -> vector<8x512xf32>
    %10 = vector.broadcast %1 : vector<1x512xf32> to vector<8x512xf32>
    %11 = arith.addf %9, %10 : vector<8x512xf32>
    %cst_17 = arith.constant 0.000000e+00 : f32
    %12 = vector.broadcast %cst_17 : f32 to vector<8x512xf32>
    %13 = arith.maximumf %11, %12 : vector<8x512xf32>
    %14 = arith.truncf %13 : vector<8x512xf32> to vector<8x512xbf16>
    %cst_18 = arith.constant dense<0.000000e+00> : vector<8x256xf32>
    %15 = tpu.matmul %14, %2, %cst_18 {dimension_numbers = #tpu.dot_dimension_numbers<[1], [0], [0], [1], [0, 0, 1, 1], [], []>} : vector<8x512xbf16>, vector<512x256xbf16>, vector<8x256xf32> -> vector<8x256xf32>
    %16 = vector.broadcast %3 : vector<1x256xf32> to vector<8x256xf32>
    %17 = arith.addf %15, %16 : vector<8x256xf32>
    %18 = vector.extract_strided_slice %17 {offsets = [0, 0], sizes = [8, 128], strides = [1, 1]} : vector<8x256xf32> to vector<8x128xf32>
    %19 = vector.extract_strided_slice %17 {offsets = [0, 128], sizes = [8, 128], strides = [1, 1]} : vector<8x256xf32> to vector<8x128xf32>
    %c0_19 = arith.constant 0 : index
    %c0_20 = arith.constant 0 : index
    %20 = vector.load %arg2[%c0_19, %c0_20] : memref<8x128xf32, #tpu.memory_space<vmem>>, vector<8x128xf32>
    %cst_21 = arith.constant 5.000000e-01 : f32
    %21 = vector.broadcast %cst_21 : f32 to vector<8x128xf32>
    %22 = arith.mulf %21, %19 : vector<8x128xf32>
    %23 = math.exp %22 : vector<8x128xf32>
    %24 = arith.mulf %20, %23 : vector<8x128xf32>
    %25 = arith.addf %18, %24 : vector<8x128xf32>
    %26 = arith.truncf %25 : vector<8x128xf32> to vector<8x128xbf16>
    %cst_22 = arith.constant dense<0.000000e+00> : vector<8x512xf32>
    %27 = tpu.matmul %26, %4, %cst_22 {dimension_numbers = #tpu.dot_dimension_numbers<[1], [0], [0], [1], [0, 0, 1, 1], [], []>} : vector<8x128xbf16>, vector<128x512xbf16>, vector<8x512xf32> -> vector<8x512xf32>
    %28 = vector.broadcast %5 : vector<1x512xf32> to vector<8x512xf32>
    %29 = arith.addf %27, %28 : vector<8x512xf32>
    %cst_23 = arith.constant 0.000000e+00 : f32
    %30 = vector.broadcast %cst_23 : f32 to vector<8x512xf32>
    %31 = arith.maximumf %29, %30 : vector<8x512xf32>
    %32 = arith.truncf %31 : vector<8x512xf32> to vector<8x512xbf16>
    %cst_24 = arith.constant dense<0.000000e+00> : vector<8x896xf32>
    %33 = tpu.matmul %32, %6, %cst_24 {dimension_numbers = #tpu.dot_dimension_numbers<[1], [0], [0], [1], [0, 0, 1, 1], [], []>} : vector<8x512xbf16>, vector<512x896xbf16>, vector<8x896xf32> -> vector<8x896xf32>
    %34 = vector.broadcast %7 : vector<1x896xf32> to vector<8x896xf32>
    %35 = arith.addf %33, %34 : vector<8x896xf32>
    %36 = math.tanh %35 : vector<8x896xf32>
    %37 = arith.truncf %36 : vector<8x896xf32> to vector<8x896xbf16>
    %c0_25 = arith.constant 0 : index
    %c0_26 = arith.constant 0 : index
    %38 = vector.load %arg11[%c0_25, %c0_26] : memref<8x896xbf16, #tpu.memory_space<vmem>>, vector<8x896xbf16>
    tpu.vector_store %arg11[%c0_25, %c0_26], %37 {strides = array<i32>} : memref<8x896xbf16, #tpu.memory_space<vmem>>, vector<8x896xbf16>,
    %c0_27 = arith.constant 0 : index
    %c0_28 = arith.constant 0 : index
    %39 = vector.load %arg12[%c0_27, %c0_28] : memref<8x256xf32, #tpu.memory_space<vmem>>, vector<8x256xf32>
    tpu.vector_store %arg12[%c0_27, %c0_28], %17 {strides = array<i32>} : memref<8x256xf32, #tpu.memory_space<vmem>>, vector<8x256xf32>,
    return
  }
  func.func @transform_0(%arg0: i32) -> (i32, i32) {
    %c0_i32 = arith.constant 0 : i32
    %c0_i32_0 = arith.constant 0 : i32
    return %arg0, %c0_i32 : i32, i32
  }
  func.func @transform_1(%arg0: i32) -> (i32, i32) {
    %c0_i32 = arith.constant 0 : i32
    %c0_i32_0 = arith.constant 0 : i32
    return %arg0, %c0_i32 : i32, i32
  }
  func.func @transform_2(%arg0: i32) -> (i32, i32) {
    %c0_i32 = arith.constant 0 : i32
    %c0_i32_0 = arith.constant 0 : i32
    %c0_i32_1 = arith.constant 0 : i32
    return %c0_i32, %c0_i32_0 : i32, i32
  }
  func.func @transform_3(%arg0: i32) -> (i32, i32) {
    %c0_i32 = arith.constant 0 : i32
    %c0_i32_0 = arith.constant 0 : i32
    %c0_i32_1 = arith.constant 0 : i32
    return %c0_i32, %c0_i32_0 : i32, i32
  }
  func.func @transform_4(%arg0: i32) -> (i32, i32) {
    %c0_i32 = arith.constant 0 : i32
    %c0_i32_0 = arith.constant 0 : i32
    %c0_i32_1 = arith.constant 0 : i32
    return %c0_i32, %c0_i32_0 : i32, i32
  }
  func.func @transform_5(%arg0: i32) -> (i32, i32) {
    %c0_i32 = arith.constant 0 : i32
    %c0_i32_0 = arith.constant 0 : i32
    %c0_i32_1 = arith.constant 0 : i32
    return %c0_i32, %c0_i32_0 : i32, i32
  }
  func.func @transform_6(%arg0: i32) -> (i32, i32) {
    %c0_i32 = arith.constant 0 : i32
    %c0_i32_0 = arith.constant 0 : i32
    %c0_i32_1 = arith.constant 0 : i32
    return %c0_i32, %c0_i32_0 : i32, i32
  }
  func.func @transform_7(%arg0: i32) -> (i32, i32) {
    %c0_i32 = arith.constant 0 : i32
    %c0_i32_0 = arith.constant 0 : i32
    %c0_i32_1 = arith.constant 0 : i32
    return %c0_i32, %c0_i32_0 : i32, i32
  }
  func.func @transform_8(%arg0: i32) -> (i32, i32) {
    %c0_i32 = arith.constant 0 : i32
    %c0_i32_0 = arith.constant 0 : i32
    %c0_i32_1 = arith.constant 0 : i32
    return %c0_i32, %c0_i32_0 : i32, i32
  }
  func.func @transform_9(%arg0: i32) -> (i32, i32) {
    %c0_i32 = arith.constant 0 : i32
    %c0_i32_0 = arith.constant 0 : i32
    %c0_i32_1 = arith.constant 0 : i32
    return %c0_i32, %c0_i32_0 : i32, i32
  }
  func.func @transform_10(%arg0: i32) -> (i32, i32) {
    %c0_i32 = arith.constant 0 : i32
    %c0_i32_0 = arith.constant 0 : i32
    return %arg0, %c0_i32 : i32, i32
  }
  func.func @transform_11(%arg0: i32) -> (i32, i32) {
    %c0_i32 = arith.constant 0 : i32
    %c0_i32_0 = arith.constant 0 : i32
    return %arg0, %c0_i32 : i32, i32
  }
}

</mosaic_0001>

<bundles_post_ra>
// kernel: tpu_custom_call.1
= control target key start
LH: loop header
LB: loop body
LE: loop exit
PB: predicated region body
PF: predicated region fallthrough
CT: control target
= control target key end

     0   :  { %17 = vsyncpa [#allocation3], 0  ;;  %s6351_s0 = inlined_call_operand.hbm [shape: bf16[8,896], index: 0, kind: input, shape index: {}]   ;;  %s6352_s1 = inlined_call_operand.hbm [shape: f32[8,128], index: 1, kind: input, shape index: {}]   ;;  %s6353_s2 = inlined_call_operand.hbm [shape: bf16[896,512], index: 2, kind: input, shape index: {}]   ;;  %s6354_s3 = inlined_call_operand.vmem [shape: f32[1,512], index: 3, kind: input, shape index: {}]   ;;  %s6355_s4 = inlined_call_operand.hbm [shape: bf16[512,256], index: 4, kind: input, shape index: {}]   ;;  %s6356_s5 = inlined_call_operand.vmem [shape: f32[1,256], index: 5, kind: input, shape index: {}]   ;;  %s6357_s6 = inlined_call_operand.hbm [shape: bf16[128,512], index: 6, kind: input, shape index: {}]   ;;  %s6358_s7 = inlined_call_operand.hbm [shape: f32[1,512], index: 7, kind: input, shape index: {}]   ;;  %s6359_s8 = inlined_call_operand.hbm [shape: bf16[512,896], index: 8, kind: input, shape index: {}]   ;;  %s6360_s9 = inlined_call_operand.vmem [shape: f32[1,896], index: 9, kind: input, shape index: {}]   ;;  %s6361_s10 = inlined_call_operand.hbm [shape: bf16[8,896], index: 10, kind: output, shape index: {0}]   ;;  %s6362_s11 = inlined_call_operand.hbm [shape: f32[8,256], index: 11, kind: output, shape index: {1}]  }
   0x1   :  { %18 = vsyncpa [#allocation6], 0 }
   0x2   :  { %19 = vsyncpa [#allocation9], 0 }
   0x3   :  { %20 = vsyncpa [#allocation12], 0 }
   0x4   :  { %21 = vsyncpa [#allocation4], 0 }
   0x5   :  { %22 = vsyncpa [#allocation16], 0  ;;  %s6129_s17 = smov [#allocation5]   ;;  %s6130_s19 = smov [#allocation8]  }
   0x6   :  { %s39_s18 = sshll.u32 %s6129_s17, 4  ;;  %s62_s20 = sshll.u32 %s6130_s19, 4  ;;  %s40_s18 = int_to_ptr.vmem [resolvable:$true] %s39_s18  ;;  %s63_s20 = int_to_ptr.vmem [resolvable:$true] %s62_s20 }
   0x7   :  { %s5945_s21 = scalar_lea.vmem %s40_s18, 128  ;;  %p5950_p1 = scmp.lt.s32.totalorder %s40_s18, %s40_s18 }
   0x8   :  { %p5946_p0 = scmp.ne.s32.totalorder %s40_s18, %s5945_s21  ;;  %p5951_p2 = scmp.lt.s32.totalorder %s5945_s21, %s5945_s21 }
   0xa   :  { %p5952_p3 = por %p5951_p2, %p5950_p1 }
   0xc   :  { %p5953_p4 = pnand %p5952_p3, %p5946_p0 }
   0xe   :  { %5956 = shalt.err (!%p5953_p4)
}
   0xf   :  { %42 = dma.hbm_to_vmem [thread:$0]  %s6352_s1, 128, %s40_s18, [#allocation6]  }
  0x10   :  { %s5965_s24 = scalar_lea.vmem %s63_s20, 8192  ;;  %p5970_p6 = scmp.lt.s32.totalorder %s63_s20, %s63_s20 }
  0x11   :  { %p5966_p5 = scmp.ne.s32.totalorder %s63_s20, %s5965_s24  ;;  %p5971_p7 = scmp.lt.s32.totalorder %s5965_s24, %s5965_s24 }
  0x13   :  { %p5972_p8 = por %p5971_p7, %p5970_p6 }
  0x15   :  { %p5973_p9 = pnand %p5972_p8, %p5966_p5 }
  0x17   :  { %5976 = shalt.err (!%p5973_p9)
}
  0x18   :  { %s6131_s25 = smov 128   ;;  %s6132_s26 = smov 8  }
  0x19   :  { %68 = dma.hbm_to_vmem [thread:$0]  %s6355_s4, 8192, %s63_s20, [#allocation9], %s6131_s25, %s6131_s25, %s6132_s26  }
  0x1a   :  { %s6133_s29 = smov [#allocation11]   ;;  %s6134_s12 = smov [#allocation2]  }
  0x1b   :  { %s89_s30 = sshll.u32 %s6133_s29, 4  ;;  %s29_s13 = sshll.u32 %s6134_s12, 4  ;;  %s90_s30 = int_to_ptr.vmem [resolvable:$true] %s89_s30  ;;  %s30_s13 = int_to_ptr.vmem [resolvable:$true] %s29_s13 }
  0x1c   :  { %s5985_s1 = scalar_lea.vmem %s90_s30, 64  ;;  %p5990_p11 = scmp.lt.s32.totalorder %s90_s30, %s90_s30 }
  0x1d   :  { %p5986_p10 = scmp.ne.s32.totalorder %s90_s30, %s5985_s1  ;;  %p5991_p12 = scmp.lt.s32.totalorder %s5985_s1, %s5985_s1 }
  0x1f   :  { %p5992_p13 = por %p5991_p12, %p5990_p11 }
  0x21   :  { %p5993_p0 = pnand %p5992_p13, %p5986_p10 }
  0x23   :  { %5996 = shalt.err (!%p5993_p0)
}
  0x24   :  { %92 = dma.hbm_to_vmem [thread:$0]  %s6358_s7, 64, %s90_s30, [#allocation12]  }
  0x25   :  { %s6005_s16 = scalar_lea.vmem %s30_s13, 448  ;;  %p6010_p2 = scmp.lt.s32.totalorder %s30_s13, %s30_s13 }
  0x26   :  { %p6006_p1 = scmp.ne.s32.totalorder %s30_s13, %s6005_s16  ;;  %p6011_p3 = scmp.lt.s32.totalorder %s6005_s16, %s6005_s16 }
  0x28   :  { %p6012_p4 = por %p6011_p3, %p6010_p2 }
  0x2a   :  { %p6013_p5 = pnand %p6012_p4, %p6006_p1 }
  0x2c   :  { %6016 = shalt.err (!%p6013_p5)
}
  0x2d   :  { %32 = dma.hbm_to_vmem [thread:$0]  %s6351_s0, 448, %s30_s13, [#allocation3]  }
  0x2e   :  { %s6135_s18 = smov [#allocation7]  }
  0x2f   :  { %s48_s19 = sshll.u32 %s6135_s18, 4  ;;  %s49_s19 = int_to_ptr.vmem [resolvable:$true] %s48_s19 }
  0x30   :  { %s6025_s20 = scalar_lea.vmem %s49_s19, 28672  ;;  %p6030_p7 = scmp.lt.s32.totalorder %s49_s19, %s49_s19 }
  0x31   :  { %p6026_p6 = scmp.ne.s32.totalorder %s49_s19, %s6025_s20  ;;  %p6031_p8 = scmp.lt.s32.totalorder %s6025_s20, %s6025_s20 }
  0x33   :  { %p6032_p9 = por %p6031_p8, %p6030_p7 }
  0x35   :  { %p6033_p10 = pnand %p6032_p9, %p6026_p6 }
  0x37   :  { %6036 = shalt.err (!%p6033_p10)
}
  0x38   :  { %s6136_s7 = smov 256   ;;  %s6137_s21 = smov 16  }
  0x39   :  { %54 = dma.hbm_to_vmem [thread:$0]  %s6353_s2, 28672, %s49_s19, [#allocation6], %s6136_s7, %s6136_s7, %s6137_s21  }
  0x3a   :  { %s6138_s24 = smov [#allocation10]   ;;  %s6139_s0 = smov [#allocation13]  }
  0x3b   :  { %s76_s25 = sshll.u32 %s6138_s24, 4  ;;  %s98_s26 = sshll.u32 %s6139_s0, 4  ;;  %s77_s25 = int_to_ptr.vmem [resolvable:$true] %s76_s25  ;;  %s99_s26 = int_to_ptr.vmem [resolvable:$true] %s98_s26 }
  0x3c   :  { %s6045_s27 = scalar_lea.vmem %s77_s25, 4096  ;;  %p6050_p12 = scmp.lt.s32.totalorder %s77_s25, %s77_s25 }
  0x3d   :  { %p6046_p11 = scmp.ne.s32.totalorder %s77_s25, %s6045_s27  ;;  %p6051_p13 = scmp.lt.s32.totalorder %s6045_s27, %s6045_s27 }
  0x3f   :  { %p6052_p0 = por %p6051_p13, %p6050_p12 }
  0x41   :  { %p6053_p1 = pnand %p6052_p0, %p6046_p11 }
  0x43   :  { %6056 = shalt.err (!%p6053_p1)
}
  0x44   :  { %82 = dma.hbm_to_vmem [thread:$0]  %s6357_s6, 4096, %s77_s25, [#allocation9], %s6136_s7, %s6136_s7, %s6137_s21  }
  0x45   :  { %s6065_s30 = scalar_lea.vmem %s99_s26, 28672  ;;  %p6070_p3 = scmp.lt.s32.totalorder %s99_s26, %s99_s26 }
  0x46   :  { %p6066_p2 = scmp.ne.s32.totalorder %s99_s26, %s6065_s30  ;;  %p6071_p4 = scmp.lt.s32.totalorder %s6065_s30, %s6065_s30 }
  0x48   :  { %p6072_p5 = por %p6071_p4, %p6070_p3 }
  0x4a   :  { %p6073_p6 = pnand %p6072_p5, %p6066_p2 }
  0x4c   :  { %6076 = shalt.err (!%p6073_p6)
}
  0x4d   :  { %s6140_s2 = smov 448   ;;  %s6141_s12 = smov 28  }
  0x4e   :  { %104 = dma.hbm_to_vmem [thread:$0]  %s6359_s8, 28672, %s99_s26, [#allocation12], %s6140_s2, %s6140_s2, %s6141_s12  }
  0x4f   :  { %6117 = dma.done.wait [#allocation3], 448  }
  0x50   :  { %6118 = vsyncadd [#allocation3], 4294966848 }
  0x51   :  { %6119 = dma.done.wait [#allocation6], 28800  }
  0x52   :  { %6120 = vsyncadd [#allocation6], 4294938496 }
  0x53   :  { %6121 = dma.done.wait [#allocation9], 12288  }
  0x54   :  { %6122 = vsyncadd [#allocation9], 4294955008 }
  0x55   :  { %6123 = dma.done.wait [#allocation12], 28736  }
  0x56   :  { %6124 = vsyncadd [#allocation12], 4294938560  ;;  %v5113_v0 = vld [vmem:[#allocation7 + $0xe4] ss:$16 sps:$4 sm:$0xff]   ;;  %v5117_v2 = vld [vmem:[#allocation7 + $0xe0] ss:$16 sps:$4 sm:$0xff]  }
  0x57   :  { %v5115_v1 = vld [vmem:[#allocation7 + $0x2e4] ss:$16 sps:$4 sm:$0xff]   ;;  %1879 = vmatprep.subr.bf16.mxu0 %v5113_v0  ;;  %v5118_v3 = vld [vmem:[#allocation7 + $0x2e0] ss:$16 sps:$4 sm:$0xff]  }
  0x58   :  { %1920 = vmatprep.subr.bf16.mxu1 %v5115_v1  ;;  %v5119_v4 = vld [vmem:[#allocation7 + $0xc4] ss:$16 sps:$4 sm:$0xff]   ;;  %1880 = vmatpush1.bf16.msra.mxu0 %v5117_v2  ;;  %v5123_v6 = vld [vmem:[#allocation7 + $0xc0] ss:$16 sps:$4 sm:$0xff]  }
  0x59   :  { %1921 = vmatpush1.bf16.msra.mxu1 %v5118_v3  ;;  %v5121_v5 = vld [vmem:[#allocation7 + $0x2c4] ss:$16 sps:$4 sm:$0xff]   ;;  %1881 = vmatprep.subr.bf16.mxu0 %v5119_v4  ;;  %v5124_v7 = vld [vmem:[#allocation7 + $0x2c0] ss:$16 sps:$4 sm:$0xff]  }
  0x5a   :  { %1922 = vmatprep.subr.bf16.mxu1 %v5121_v5  ;;  %v5125_v8 = vld [vmem:[#allocation7 + $0xa4] ss:$16 sps:$4 sm:$0xff]   ;;  %v5129_v10 = vld [vmem:[#allocation7 + $0xa0] ss:$16 sps:$4 sm:$0xff]  }
  0x5b   :  { %v5127_v9 = vld [vmem:[#allocation7 + $0x2a4] ss:$16 sps:$4 sm:$0xff]   ;;  %v5130_v11 = vld [vmem:[#allocation7 + $0x2a0] ss:$16 sps:$4 sm:$0xff]  }
  0x5c   :  { %1882 = vmatpush1.bf16.msra.mxu0 %v5123_v6  ;;  %v5131_v12 = vld [vmem:[#allocation7 + $0x84] ss:$16 sps:$4 sm:$0xff]   ;;  %v5135_v14 = vld [vmem:[#allocation7 + $0x80] ss:$16 sps:$4 sm:$0xff]  }
  0x5d   :  { %1923 = vmatpush1.bf16.msra.mxu1 %v5124_v7  ;;  %1883 = vmatprep.subr.bf16.mxu0 %v5125_v8  ;;  %v5133_v13 = vld [vmem:[#allocation7 + $0x284] ss:$16 sps:$4 sm:$0xff]   ;;  %v5136_v15 = vld [vmem:[#allocation7 + $0x280] ss:$16 sps:$4 sm:$0xff]  }
  0x5e   :  { %1924 = vmatprep.subr.bf16.mxu1 %v5127_v9  ;;  %v5137_v16 = vld [vmem:[#allocation7 + $0x64] ss:$16 sps:$4 sm:$0xff]   ;;  %v5141_v18 = vld [vmem:[#allocation7 + $0x60] ss:$16 sps:$4 sm:$0xff]  }
  0x5f   :  { %v5139_v17 = vld [vmem:[#allocation7 + $0x264] ss:$16 sps:$4 sm:$0xff]   ;;  %v5142_v19 = vld [vmem:[#allocation7 + $0x260] ss:$16 sps:$4 sm:$0xff]  }
  0x60   :  { %1884 = vmatpush1.bf16.msra.mxu0 %v5129_v10  ;;  %v5143_v20 = vld [vmem:[#allocation7 + $0x44] ss:$16 sps:$4 sm:$0xff]   ;;  %v5147_v22 = vld [vmem:[#allocation7 + $0x40] ss:$16 sps:$4 sm:$0xff]  }
  0x61   :  { %1925 = vmatpush1.bf16.msra.mxu1 %v5130_v11  ;;  %1885 = vmatprep.subr.bf16.mxu0 %v5131_v12  ;;  %v5145_v21 = vld [vmem:[#allocation7 + $0x244] ss:$16 sps:$4 sm:$0xff]   ;;  %v5148_v23 = vld [vmem:[#allocation7 + $0x240] ss:$16 sps:$4 sm:$0xff]  }
  0x62   :  { %1926 = vmatprep.subr.bf16.mxu1 %v5133_v13  ;;  %v5149_v24 = vld [vmem:[#allocation7 + $0x24] ss:$16 sps:$4 sm:$0xff]   ;;  %v5153_v26 = vld [vmem:[#allocation7 + $0x20] ss:$16 sps:$4 sm:$0xff]  }
  0x63   :  { %v5151_v25 = vld [vmem:[#allocation7 + $0x224] ss:$16 sps:$4 sm:$0xff]   ;;  %v5154_v27 = vld [vmem:[#allocation7 + $0x220] ss:$16 sps:$4 sm:$0xff]  }
  0x64   :  { %1886 = vmatpush1.bf16.msra.mxu0 %v5135_v14  ;;  %v5155_v28 = vld [vmem:[#allocation7 + $0x4] ss:$16 sps:$4 sm:$0xff]   ;;  %v5159_v30 = vld [vmem:[#allocation7] ss:$16 sps:$4 sm:$0xff]  }
  0x65   :  { %1927 = vmatpush1.bf16.msra.mxu1 %v5136_v15  ;;  %1887 = vmatprep.subr.bf16.mxu0 %v5137_v16  ;;  %v5157_v29 = vld [vmem:[#allocation7 + $0x204] ss:$16 sps:$4 sm:$0xff]   ;;  %v5160_v31 = vld [vmem:[#allocation7 + $0x200] ss:$16 sps:$4 sm:$0xff]   ;;  %v6142_v16 = vmov 0  }
  0x66   :  { %1928 = vmatprep.subr.bf16.mxu1 %v5139_v17  ;;  %v5161_v32 = vld [vmem:[#allocation7 + $0x1e4] ss:$16 sps:$4 sm:$0xff]   ;;  %v5165_v34 = vld [vmem:[#allocation7 + $0x1e0] ss:$16 sps:$4 sm:$0xff]  }
  0x67   :  { %v5163_v33 = vld [vmem:[#allocation7 + $0x3e4] ss:$16 sps:$4 sm:$0xff]   ;;  %v5166_v35 = vld [vmem:[#allocation7 + $0x3e0] ss:$16 sps:$4 sm:$0xff]  }
  0x68   :  { %1888 = vmatpush1.bf16.msra.mxu0 %v5141_v18  ;;  %v5167_v36 = vld [vmem:[#allocation7 + $0x1c4] ss:$16 sps:$4 sm:$0xff]   ;;  %v5171_v38 = vld [vmem:[#allocation7 + $0x1c0] ss:$16 sps:$4 sm:$0xff]  }
  0x69   :  { %1929 = vmatpush1.bf16.msra.mxu1 %v5142_v19  ;;  %1889 = vmatprep.subr.bf16.mxu0 %v5143_v20  ;;  %v5169_v37 = vld [vmem:[#allocation7 + $0x3c4] ss:$16 sps:$4 sm:$0xff]   ;;  %v5172_v39 = vld [vmem:[#allocation7 + $0x3c0] ss:$16 sps:$4 sm:$0xff]  }
  0x6a   :  { %1930 = vmatprep.subr.bf16.mxu1 %v5145_v21  ;;  %v5173_v40 = vld [vmem:[#allocation7 + $0x1a4] ss:$16 sps:$4 sm:$0xff]   ;;  %v5177_v42 = vld [vmem:[#allocation7 + $0x1a0] ss:$16 sps:$4 sm:$0xff]  }
  0x6b   :  { %v5175_v41 = vld [vmem:[#allocation7 + $0x3a4] ss:$16 sps:$4 sm:$0xff]   ;;  %v5178_v43 = vld [vmem:[#allocation7 + $0x3a0] ss:$16 sps:$4 sm:$0xff]  }
  0x6c   :  { %1890 = vmatpush1.bf16.msra.mxu0 %v5147_v22  ;;  %v5179_v44 = vld [vmem:[#allocation7 + $0x184] ss:$16 sps:$4 sm:$0xff]   ;;  %v709_v46 = vld [vmem:[#allocation2] sm:$0xff] }
  0x6d   :  { %1931 = vmatpush1.bf16.msra.mxu1 %v5148_v23  ;;  %1891 = vmatprep.subr.bf16.mxu0 %v5149_v24  ;;  %v5181_v45 = vld [vmem:[#allocation7 + $0x384] ss:$16 sps:$4 sm:$0xff]   ;;  %v6226_v47 = vcombine.high %v709_v46, %v709_v46  ;;  %v5183_v49 = vld [vmem:[#allocation7 + $0x180] ss:$16 sps:$4 sm:$0xff]   ;;  %v6232_v6 = vcombine.low %v709_v46, %v709_v46 }
  0x6e   :  { %1932 = vmatprep.subr.bf16.mxu1 %v5151_v25  ;;  %v710_v48 = vld [vmem:[#allocation2 + $0x8] sm:$0xff]  ;;  %v5184_v50 = vld [vmem:[#allocation7 + $0x380] ss:$16 sps:$4 sm:$0xff]  }
  0x6f   :  { %v6228_v51 = vcombine.high %v710_v48, %v710_v48  ;;  %v5185_v52 = vld [vmem:[#allocation7 + $0x164] ss:$16 sps:$4 sm:$0xff]   ;;  %1911 = vmatprep.mubr.bf16.mxu0 %v6226_v47  ;;  %v5189_v54 = vld [vmem:[#allocation7 + $0x160] ss:$16 sps:$4 sm:$0xff]   ;;  %v6234_v7 = vcombine.low %v710_v48, %v710_v48  ;;  %v5273_v48 = vld [vmem:[#allocation7 + $0xcc] ss:$16 sps:$4 sm:$0xff]  }
  0x70   :  { %1892 = vmatpush1.bf16.msra.mxu0 %v5153_v26  ;;  %v5187_v53 = vld [vmem:[#allocation7 + $0x364] ss:$16 sps:$4 sm:$0xff]   ;;  %v5190_v55 = vld [vmem:[#allocation7 + $0x360] ss:$16 sps:$4 sm:$0xff]  }
  0x71   :  { %1933 = vmatpush1.bf16.msra.mxu1 %v5154_v27  ;;  %1893 = vmatprep.subr.bf16.mxu0 %v5155_v28  ;;  %v5191_v56 = vld [vmem:[#allocation7 + $0x144] ss:$16 sps:$4 sm:$0xff]   ;;  %v5195_v58 = vld [vmem:[#allocation7 + $0x140] ss:$16 sps:$4 sm:$0xff]  }
  0x72   :  { %1934 = vmatprep.subr.bf16.mxu1 %v5157_v29  ;;  %1952 = vmatprep.mubr.bf16.mxu1 %v6228_v51  ;;  %v5193_v57 = vld [vmem:[#allocation7 + $0x344] ss:$16 sps:$4 sm:$0xff]   ;;  %v5196_v59 = vld [vmem:[#allocation7 + $0x340] ss:$16 sps:$4 sm:$0xff]  }
  0x73   :  { %v5197_v60 = vld [vmem:[#allocation7 + $0x124] ss:$16 sps:$4 sm:$0xff]   ;;  %v5201_v62 = vld [vmem:[#allocation7 + $0x120] ss:$16 sps:$4 sm:$0xff]  }
  0x74   :  { %1894 = vmatpush1.bf16.msra.mxu0 %v5159_v30  ;;  %v5199_v61 = vld [vmem:[#allocation7 + $0x324] ss:$16 sps:$4 sm:$0xff]   ;;  %v5202_v63 = vld [vmem:[#allocation7 + $0x320] ss:$16 sps:$4 sm:$0xff]  }
  0x75   :  { %1935 = vmatpush1.bf16.msra.mxu1 %v5160_v31  ;;  %1895 = vmatprep.subr.bf16.mxu0 %v5161_v32  ;;  %v5203_v0 = vld [vmem:[#allocation7 + $0x104] ss:$16 sps:$4 sm:$0xff]   ;;  %v5207_v2 = vld [vmem:[#allocation7 + $0x100] ss:$16 sps:$4 sm:$0xff]  }
  0x76   :  { %1936 = vmatprep.subr.bf16.mxu1 %v5163_v33  ;;  %v5205_v1 = vld [vmem:[#allocation7 + $0x304] ss:$16 sps:$4 sm:$0xff]   ;;  %v5208_v3 = vld [vmem:[#allocation7 + $0x300] ss:$16 sps:$4 sm:$0xff]  }
  0x77   :  { %v5215_v4 = vld [vmem:[#allocation7 + $0x4e4] ss:$16 sps:$4 sm:$0xff]   ;;  %v5213_v8 = vld [vmem:[#allocation7 + $0x4e0] ss:$16 sps:$4 sm:$0xff]  }
  0x78   :  { %1896 = vmatpush2.bf16.msra.mxu0 %v5165_v34  ;;  %v5218_v5 = vld [vmem:[#allocation7 + $0x6e4] ss:$16 sps:$4 sm:$0xff]   ;;  %v5216_v9 = vld [vmem:[#allocation7 + $0x6e0] ss:$16 sps:$4 sm:$0xff]  }
  0x79   :  { %1937 = vmatpush2.bf16.msra.mxu1 %v5166_v35  ;;  %1897 = vmatprep.subr.bf16.mxu0 %v5167_v36  ;;  %v5221_v10 = vld [vmem:[#allocation7 + $0x4c4] ss:$16 sps:$4 sm:$0xff]   ;;  %v5219_v12 = vld [vmem:[#allocation7 + $0x4c0] ss:$16 sps:$4 sm:$0xff]  }
  0x7a   :  { %1938 = vmatprep.subr.bf16.mxu1 %v5169_v37  ;;  %v5224_v11 = vld [vmem:[#allocation7 + $0x6c4] ss:$16 sps:$4 sm:$0xff]   ;;  %v5222_v13 = vld [vmem:[#allocation7 + $0x6c0] ss:$16 sps:$4 sm:$0xff]  }
  0x7b   :  { %v5227_v14 = vld [vmem:[#allocation7 + $0x4a4] ss:$16 sps:$4 sm:$0xff]   ;;  %v5225_v17 = vld [vmem:[#allocation7 + $0x4a0] ss:$16 sps:$4 sm:$0xff]  }
  0x7c   :  { %1898 = vmatpush2.bf16.msra.mxu0 %v5171_v38  ;;  %v5230_v15 = vld [vmem:[#allocation7 + $0x6a4] ss:$16 sps:$4 sm:$0xff]   ;;  %v5228_v18 = vld [vmem:[#allocation7 + $0x6a0] ss:$16 sps:$4 sm:$0xff]  }
  0x7d   :  { %1939 = vmatpush2.bf16.msra.mxu1 %v5172_v39  ;;  %1899 = vmatprep.subr.bf16.mxu0 %v5173_v40  ;;  %v5233_v19 = vld [vmem:[#allocation7 + $0x484] ss:$16 sps:$4 sm:$0xff]   ;;  %v5231_v21 = vld [vmem:[#allocation7 + $0x480] ss:$16 sps:$4 sm:$0xff]  }
  0x7e   :  { %1940 = vmatprep.subr.bf16.mxu1 %v5175_v41  ;;  %v5236_v20 = vld [vmem:[#allocation7 + $0x684] ss:$16 sps:$4 sm:$0xff]   ;;  %v5234_v22 = vld [vmem:[#allocation7 + $0x680] ss:$16 sps:$4 sm:$0xff]  }
  0x7f   :  { %v5239_v23 = vld [vmem:[#allocation7 + $0x464] ss:$16 sps:$4 sm:$0xff]   ;;  %v5237_v25 = vld [vmem:[#allocation7 + $0x460] ss:$16 sps:$4 sm:$0xff]  }
  0x80   :  { %1900 = vmatpush2.bf16.msra.mxu0 %v5177_v42  ;;  %v5242_v24 = vld [vmem:[#allocation7 + $0x664] ss:$16 sps:$4 sm:$0xff]   ;;  %v5240_v26 = vld [vmem:[#allocation7 + $0x660] ss:$16 sps:$4 sm:$0xff]   ;;  %v5267_v42 = vld [vmem:[#allocation7 + $0xec] ss:$16 sps:$4 sm:$0xff]  }
  0x81   :  { %1941 = vmatpush2.bf16.msra.mxu1 %v5178_v43  ;;  %1901 = vmatprep.subr.bf16.mxu0 %v5179_v44  ;;  %v5245_v27 = vld [vmem:[#allocation7 + $0x444] ss:$16 sps:$4 sm:$0xff]   ;;  %v5243_v29 = vld [vmem:[#allocation7 + $0x440] ss:$16 sps:$4 sm:$0xff]  }
  0x82   :  { %1942 = vmatprep.subr.bf16.mxu1 %v5181_v45  ;;  %v5248_v28 = vld [vmem:[#allocation7 + $0x644] ss:$16 sps:$4 sm:$0xff]   ;;  %v5246_v30 = vld [vmem:[#allocation7 + $0x640] ss:$16 sps:$4 sm:$0xff]   ;;  %v5265_v45 = vld [vmem:[#allocation7 + $0xe8] ss:$16 sps:$4 sm:$0xff]  }
  0x83   :  { %v5251_v31 = vld [vmem:[#allocation7 + $0x424] ss:$16 sps:$4 sm:$0xff]   ;;  %v6239_v33 = vld [vmem:[#allocation2 + $0x10] sm:$0xff] }
  0x84   :  { %1902 = vmatpush2.bf16.msra.mxu0 %v5183_v49  ;;  %v5254_v32 = vld [vmem:[#allocation7 + $0x624] ss:$16 sps:$4 sm:$0xff]   ;;  %v5249_v34 = vld [vmem:[#allocation7 + $0x420] ss:$16 sps:$4 sm:$0xff]   ;;  %v6243_v35 = vcombine.high %v6239_v33, %v6239_v33 }
  0x85   :  { %1943 = vmatpush2.bf16.msra.mxu1 %v5184_v50  ;;  %1903 = vmatprep.subr.bf16.mxu0 %v5185_v52  ;;  %v5252_v36 = vld [vmem:[#allocation7 + $0x620] ss:$16 sps:$4 sm:$0xff]   ;;  %v5257_v37 = vld [vmem:[#allocation7 + $0x404] ss:$16 sps:$4 sm:$0xff]   ;;  %v5271_v50 = vld [vmem:[#allocation7 + $0xc8] ss:$16 sps:$4 sm:$0xff]  }
  0x86   :  { %1944 = vmatprep.subr.bf16.mxu1 %v5187_v53  ;;  %v5260_v38 = vld [vmem:[#allocation7 + $0x604] ss:$16 sps:$4 sm:$0xff]   ;;  %v5255_v39 = vld [vmem:[#allocation7 + $0x400] ss:$16 sps:$4 sm:$0xff]   ;;  %v5279_v53 = vld [vmem:[#allocation7 + $0xac] ss:$16 sps:$4 sm:$0xff]  }
  0x87   :  { %v5258_v40 = vld [vmem:[#allocation7 + $0x600] ss:$16 sps:$4 sm:$0xff]   ;;  %v5263_v41 = vld [vmem:[#allocation7 + $0x5e4] ss:$16 sps:$4 sm:$0xff]  }
  0x88   :  { %1904 = vmatpush2.bf16.msra.mxu0 %v5189_v54  ;;  %v5261_v43 = vld [vmem:[#allocation7 + $0x5e0] ss:$16 sps:$4 sm:$0xff]   ;;  %v5264_v44 = vld [vmem:[#allocation2 + $0x18] ss:$0 sps:$4 sm:$0xff]  }
  0x89   :  { %1945 = vmatpush2.bf16.msra.mxu1 %v5190_v55  ;;  %1905 = vmatprep.subr.bf16.mxu0 %v5191_v56  ;;  %v5270_v46 = vld [vmem:[#allocation7 + $0x5c4] ss:$16 sps:$4 sm:$0xff]   ;;  %v5268_v49 = vld [vmem:[#allocation7 + $0x5c0] ss:$16 sps:$4 sm:$0xff]   ;;  %v5277_v55 = vld [vmem:[#allocation7 + $0xa8] ss:$16 sps:$4 sm:$0xff]  }
  0x8a   :  { %1946 = vmatprep.subr.bf16.mxu1 %v5193_v57  ;;  %v5276_v52 = vld [vmem:[#allocation7 + $0x5a4] ss:$16 sps:$4 sm:$0xff]   ;;  %v5274_v54 = vld [vmem:[#allocation7 + $0x5a0] ss:$16 sps:$4 sm:$0xff]   ;;  %v5285_v57 = vld [vmem:[#allocation7 + $0x8c] ss:$16 sps:$4 sm:$0xff]  }
  0x8b   :  { %v5282_v56 = vld [vmem:[#allocation7 + $0x584] ss:$16 sps:$4 sm:$0xff]  }
  0x8c   :  { %1906 = vmatpush2.bf16.msra.mxu0 %v5195_v58  ;;  %v5280_v58 = vld [vmem:[#allocation7 + $0x580] ss:$16 sps:$4 sm:$0xff]  }
  0x8d   :  { %1947 = vmatpush2.bf16.msra.mxu1 %v5196_v59  ;;  %1907 = vmatprep.subr.bf16.mxu0 %v5197_v60  ;;  %v5283_v59 = vld [vmem:[#allocation7 + $0x88] ss:$16 sps:$4 sm:$0xff]   ;;  %v5288_v60 = vld [vmem:[#allocation7 + $0x564] ss:$16 sps:$4 sm:$0xff]  }
  0x8e   :  { %1948 = vmatprep.subr.bf16.mxu1 %v5199_v61  ;;  %v5291_v61 = vld [vmem:[#allocation7 + $0x6c] ss:$16 sps:$4 sm:$0xff]  }
  0x90   :  { %1908 = vmatpush2.bf16.msra.mxu0 %v5201_v62  ;;  %v5286_v62 = vld [vmem:[#allocation7 + $0x560] ss:$16 sps:$4 sm:$0xff]  }
  0x91   :  { %1949 = vmatpush2.bf16.msra.mxu1 %v5202_v63  ;;  %1909 = vmatprep.subr.bf16.mxu0 %v5203_v0  ;;  %v5294_v63 = vld [vmem:[#allocation7 + $0x544] ss:$16 sps:$4 sm:$0xff]   ;;  %v5297_v0 = vld [vmem:[#allocation7 + $0x4c] ss:$16 sps:$4 sm:$0xff]  }
  0x92   :  { %1950 = vmatprep.subr.bf16.mxu1 %v5205_v1  ;;  %v5292_v1 = vld [vmem:[#allocation7 + $0x540] ss:$16 sps:$4 sm:$0xff]  }
  0x94   :  { %1910 = vmatpush2.bf16.msra.mxu0 %v5207_v2  ;;  %v5295_v2 = vld [vmem:[#allocation7 + $0x48] ss:$16 sps:$4 sm:$0xff]  }
  0x95   :  { %1951 = vmatpush2.bf16.msra.mxu1 %v5208_v3  ;;  %1961 = vmatprep.subr.bf16.mxu0 %v5215_v4  ;;  %v5300_v3 = vld [vmem:[#allocation7 + $0x524] ss:$16 sps:$4 sm:$0xff]   ;;  %v5303_v4 = vld [vmem:[#allocation7 + $0x2c] ss:$16 sps:$4 sm:$0xff]  }
  0x96   :  { %2002 = vmatprep.subr.bf16.mxu1 %v5218_v5  ;;  %v5298_v5 = vld [vmem:[#allocation7 + $0x520] ss:$16 sps:$4 sm:$0xff]  }
  0x97   :  { %1912 = vmatmul.mubr.bf16.vlgmr.msra.gmra.mxu0 %v6232_v6 }
  0x98   :  { %1953 = vmatmul.mubr.bf16.vlgmr.msra.gmra.mxu1 %v6234_v7  ;;  %1962 = vmatpush1.bf16.msra.mxu0 %v5213_v8  ;;  %v5301_v8 = vld [vmem:[#allocation7 + $0x28] ss:$16 sps:$4 sm:$0xff]  }
  0x99   :  { %2003 = vmatpush1.bf16.msra.mxu1 %v5216_v9  ;;  %1963 = vmatprep.subr.bf16.mxu0 %v5221_v10  ;;  %v5306_v9 = vld [vmem:[#allocation7 + $0x504] ss:$16 sps:$4 sm:$0xff]   ;;  %v5309_v10 = vld [vmem:[#allocation7 + $0xc] ss:$16 sps:$4 sm:$0xff]  }
  0x9a   :  { %2004 = vmatprep.subr.bf16.mxu1 %v5224_v11  ;;  %2034 = vmatprep.mubr.bf16.mxu1 %v6142_v16  ;;  %v5304_v11 = vld [vmem:[#allocation7 + $0x500] ss:$16 sps:$4 sm:$0xff]  }
  0x9b   :  { %1993 = vmatprep.mubr.bf16.mxu0 %v6243_v35 }
  0x9c   :  { %1964 = vmatpush1.bf16.msra.mxu0 %v5219_v12  ;;  %v5307_v12 = vld [vmem:[#allocation7 + $0x8] ss:$16 sps:$4 sm:$0xff]  }
  0x9d   :  { %2005 = vmatpush1.bf16.msra.mxu1 %v5222_v13  ;;  %1965 = vmatprep.subr.bf16.mxu0 %v5227_v14  ;;  %v5314_v13 = vld [vmem:[#allocation7 + $0x1ec] ss:$16 sps:$4 sm:$0xff]  }
  0x9e   :  { %2006 = vmatprep.subr.bf16.mxu1 %v5230_v15  ;;  %v5317_v14 = vld [vmem:[#allocation7 + $0x2ec] ss:$16 sps:$4 sm:$0xff]   ;;  %v6249_v15 = vcombine.low %v6239_v33, %v6239_v33  ;;  %v5336_v33 = vld [vmem:[#allocation7 + $0x168] ss:$16 sps:$4 sm:$0xff]  }
  0xa0   :  { %1966 = vmatpush1.bf16.msra.mxu0 %v5225_v17  ;;  %v5312_v17 = vld [vmem:[#allocation7 + $0x1e8] ss:$16 sps:$4 sm:$0xff]  }
  0xa1   :  { %2007 = vmatpush1.bf16.msra.mxu1 %v5228_v18  ;;  %1967 = vmatprep.subr.bf16.mxu0 %v5233_v19  ;;  %v5315_v18 = vld [vmem:[#allocation7 + $0x2e8] ss:$16 sps:$4 sm:$0xff]   ;;  %v5320_v19 = vld [vmem:[#allocation7 + $0x1cc] ss:$16 sps:$4 sm:$0xff]  }
  0xa2   :  { %2008 = vmatprep.subr.bf16.mxu1 %v5236_v20  ;;  %v5323_v20 = vld [vmem:[#allocation7 + $0x2cc] ss:$16 sps:$4 sm:$0xff]  }
  0xa4   :  { %1968 = vmatpush1.bf16.msra.mxu0 %v5231_v21  ;;  %v5318_v21 = vld [vmem:[#allocation7 + $0x1c8] ss:$16 sps:$4 sm:$0xff]  }
  0xa5   :  { %2009 = vmatpush1.bf16.msra.mxu1 %v5234_v22  ;;  %1969 = vmatprep.subr.bf16.mxu0 %v5239_v23  ;;  %v5321_v22 = vld [vmem:[#allocation7 + $0x2c8] ss:$16 sps:$4 sm:$0xff]   ;;  %v5326_v23 = vld [vmem:[#allocation7 + $0x1ac] ss:$16 sps:$4 sm:$0xff]  }
  0xa6   :  { %2010 = vmatprep.subr.bf16.mxu1 %v5242_v24  ;;  %v5329_v24 = vld [vmem:[#allocation7 + $0x2ac] ss:$16 sps:$4 sm:$0xff]  }
  0xa8   :  { %1970 = vmatpush1.bf16.msra.mxu0 %v5237_v25  ;;  %v5324_v25 = vld [vmem:[#allocation7 + $0x1a8] ss:$16 sps:$4 sm:$0xff]  }
  0xa9   :  { %2011 = vmatpush1.bf16.msra.mxu1 %v5240_v26  ;;  %1971 = vmatprep.subr.bf16.mxu0 %v5245_v27  ;;  %v5327_v26 = vld [vmem:[#allocation7 + $0x2a8] ss:$16 sps:$4 sm:$0xff]   ;;  %v5332_v27 = vld [vmem:[#allocation7 + $0x18c] ss:$16 sps:$4 sm:$0xff]  }
  0xaa   :  { %2012 = vmatprep.subr.bf16.mxu1 %v5248_v28  ;;  %v5335_v28 = vld [vmem:[#allocation7 + $0x28c] ss:$16 sps:$4 sm:$0xff]  }
  0xac   :  { %1972 = vmatpush1.bf16.msra.mxu0 %v5243_v29  ;;  %v5330_v29 = vld [vmem:[#allocation7 + $0x188] ss:$16 sps:$4 sm:$0xff]  }
  0xad   :  { %2013 = vmatpush1.bf16.msra.mxu1 %v5246_v30  ;;  %1973 = vmatprep.subr.bf16.mxu0 %v5251_v31  ;;  %v5333_v30 = vld [vmem:[#allocation7 + $0x288] ss:$16 sps:$4 sm:$0xff]   ;;  %v5338_v31 = vld [vmem:[#allocation7 + $0x16c] ss:$16 sps:$4 sm:$0xff]  }
  0xae   :  { %2014 = vmatprep.subr.bf16.mxu1 %v5254_v32  ;;  %v5341_v32 = vld [vmem:[#allocation7 + $0x26c] ss:$16 sps:$4 sm:$0xff]  }
  0xb0   :  { %1974 = vmatpush1.bf16.msra.mxu0 %v5249_v34  ;;  %v5344_v34 = vld [vmem:[#allocation7 + $0x14c] ss:$16 sps:$4 sm:$0xff]  }
  0xb1   :  { %2015 = vmatpush1.bf16.msra.mxu1 %v5252_v36  ;;  %1975 = vmatprep.subr.bf16.mxu0 %v5257_v37  ;;  %v5347_v36 = vld [vmem:[#allocation7 + $0x24c] ss:$16 sps:$4 sm:$0xff]   ;;  %v5342_v37 = vld [vmem:[#allocation7 + $0x148] ss:$16 sps:$4 sm:$0xff]  }
  0xb2   :  { %2016 = vmatprep.subr.bf16.mxu1 %v5260_v38  ;;  %v5345_v38 = vld [vmem:[#allocation7 + $0x248] ss:$16 sps:$4 sm:$0xff]  }
  0xb4   :  { %1976 = vmatpush1.bf16.msra.mxu0 %v5255_v39  ;;  %v5350_v39 = vld [vmem:[#allocation7 + $0x12c] ss:$16 sps:$4 sm:$0xff]  }
  0xb5   :  { %2017 = vmatpush1.bf16.msra.mxu1 %v5258_v40  ;;  %1977 = vmatprep.subr.bf16.mxu0 %v5263_v41  ;;  %v5353_v40 = vld [vmem:[#allocation7 + $0x22c] ss:$16 sps:$4 sm:$0xff]   ;;  %v5348_v41 = vld [vmem:[#allocation7 + $0x128] ss:$16 sps:$4 sm:$0xff]  }
  0xb6   :  { %2043 = vmatprep.subr.bf16.mxu1 %v5267_v42  ;;  %v5351_v42 = vld [vmem:[#allocation7 + $0x228] ss:$16 sps:$4 sm:$0xff]  }
  0xb8   :  { %2035 = vmatmul.mubr.bf16.vlgmr.msra.gmra.mxu1 %v5264_v44  ;;  %1978 = vmatpush2.bf16.msra.mxu0 %v5261_v43  ;;  %v5356_v43 = vld [vmem:[#allocation7 + $0x10c] ss:$16 sps:$4 sm:$0xff]  }
  0xb9   :  { %2044 = vmatpush1.bf16.msra.mxu1 %v5265_v45  ;;  %1979 = vmatprep.subr.bf16.mxu0 %v5270_v46  ;;  %v5359_v44 = vld [vmem:[#allocation7 + $0x20c] ss:$16 sps:$4 sm:$0xff]   ;;  %v5354_v45 = vld [vmem:[#allocation7 + $0x108] ss:$16 sps:$4 sm:$0xff]  }
  0xba   :  { %2045 = vmatprep.subr.bf16.mxu1 %v5273_v48  ;;  %2075 = vmatprep.mubr.bf16.mxu1 %v6226_v47  ;;  %v5289_v47 = vld [vmem:[#allocation7 + $0x68] ss:$16 sps:$4 sm:$0xff]   ;;  %v5362_v48 = vld [vmem:[#allocation7 + $0x3ec] ss:$16 sps:$4 sm:$0xff]  }
  0xbb   :  { %v5357_v46 = vld [vmem:[#allocation7 + $0x208] ss:$16 sps:$4 sm:$0xff]  }
  0xbc   :  { %1980 = vmatpush2.bf16.msra.mxu0 %v5268_v49  ;;  %v5365_v49 = vld [vmem:[#allocation7 + $0x4ec] ss:$16 sps:$4 sm:$0xff]  }
  0xbd   :  { %2046 = vmatpush1.bf16.msra.mxu1 %v5271_v50  ;;  %1981 = vmatprep.subr.bf16.mxu0 %v5276_v52  ;;  %v5360_v50 = vld [vmem:[#allocation7 + $0x3e8] ss:$16 sps:$4 sm:$0xff]  }
  0xbe   :  { %2047 = vmatprep.subr.bf16.mxu1 %v5279_v53  ;;  %v5363_v52 = vld [vmem:[#allocation7 + $0x4e8] ss:$16 sps:$4 sm:$0xff]   ;;  %v5368_v53 = vld [vmem:[#allocation7 + $0x3cc] ss:$16 sps:$4 sm:$0xff]  }
  0xc0   :  { %1982 = vmatpush2.bf16.msra.mxu0 %v5274_v54  ;;  %v5371_v54 = vld [vmem:[#allocation7 + $0x4cc] ss:$16 sps:$4 sm:$0xff]  }
  0xc1   :  { %2048 = vmatpush1.bf16.msra.mxu1 %v5277_v55  ;;  %1983 = vmatprep.subr.bf16.mxu0 %v5282_v56  ;;  %v5366_v55 = vld [vmem:[#allocation7 + $0x3c8] ss:$16 sps:$4 sm:$0xff]  }
  0xc2   :  { %2049 = vmatprep.subr.bf16.mxu1 %v5285_v57  ;;  %v5369_v56 = vld [vmem:[#allocation7 + $0x4c8] ss:$16 sps:$4 sm:$0xff]   ;;  %v5374_v57 = vld [vmem:[#allocation7 + $0x3ac] ss:$16 sps:$4 sm:$0xff]  }
  0xc4   :  { %1984 = vmatpush2.bf16.msra.mxu0 %v5280_v58  ;;  %v5377_v58 = vld [vmem:[#allocation7 + $0x4ac] ss:$16 sps:$4 sm:$0xff]  }
  0xc5   :  { %2050 = vmatpush1.bf16.msra.mxu1 %v5283_v59  ;;  %1985 = vmatprep.subr.bf16.mxu0 %v5288_v60  ;;  %v5372_v59 = vld [vmem:[#allocation7 + $0x3a8] ss:$16 sps:$4 sm:$0xff]  }
  0xc6   :  { %2051 = vmatprep.subr.bf16.mxu1 %v5291_v61  ;;  %v5375_v60 = vld [vmem:[#allocation7 + $0x4a8] ss:$16 sps:$4 sm:$0xff]   ;;  %v5380_v61 = vld [vmem:[#allocation7 + $0x38c] ss:$16 sps:$4 sm:$0xff]  }
  0xc8   :  { %1986 = vmatpush2.bf16.msra.mxu0 %v5286_v62  ;;  %v5383_v62 = vld [vmem:[#allocation7 + $0x48c] ss:$16 sps:$4 sm:$0xff]  }
  0xc9   :  { %2052 = vmatpush1.bf16.msra.mxu1 %v5289_v47  ;;  %1987 = vmatprep.subr.bf16.mxu0 %v5294_v63  ;;  %v5378_v47 = vld [vmem:[#allocation7 + $0x388] ss:$16 sps:$4 sm:$0xff]   ;;  %v5386_v63 = vld [vmem:[#allocation7 + $0x36c] ss:$16 sps:$4 sm:$0xff]  }
  0xca   :  { %2053 = vmatprep.subr.bf16.mxu1 %v5297_v0  ;;  %v5389_v0 = vld [vmem:[#allocation7 + $0x46c] ss:$16 sps:$4 sm:$0xff]  }
  0xcc   :  { %1988 = vmatpush2.bf16.msra.mxu0 %v5292_v1  ;;  %v5384_v1 = vld [vmem:[#allocation7 + $0x368] ss:$16 sps:$4 sm:$0xff]  }
  0xcd   :  { %2054 = vmatpush1.bf16.msra.mxu1 %v5295_v2  ;;  %1989 = vmatprep.subr.bf16.mxu0 %v5300_v3  ;;  %v5387_v2 = vld [vmem:[#allocation7 + $0x468] ss:$16 sps:$4 sm:$0xff]   ;;  %v5392_v3 = vld [vmem:[#allocation7 + $0x34c] ss:$16 sps:$4 sm:$0xff]  }
  0xce   :  { %2055 = vmatprep.subr.bf16.mxu1 %v5303_v4  ;;  %v5395_v4 = vld [vmem:[#allocation7 + $0x44c] ss:$16 sps:$4 sm:$0xff]  }
  0xd0   :  { %1990 = vmatpush2.bf16.msra.mxu0 %v5298_v5  ;;  %v5393_v5 = vld [vmem:[#allocation7 + $0x448] ss:$16 sps:$4 sm:$0xff]  }
  0xd1   :  { %2056 = vmatpush1.bf16.msra.mxu1 %v5301_v8  ;;  %1991 = vmatprep.subr.bf16.mxu0 %v5306_v9  ;;  %v5398_v8 = vld [vmem:[#allocation7 + $0x32c] ss:$16 sps:$4 sm:$0xff]  }
  0xd2   :  { %2057 = vmatprep.subr.bf16.mxu1 %v5309_v10  ;;  %v5401_v9 = vld [vmem:[#allocation7 + $0x42c] ss:$16 sps:$4 sm:$0xff]   ;;  %v5396_v10 = vld [vmem:[#allocation7 + $0x328] ss:$16 sps:$4 sm:$0xff]  }
  0xd4   :  { %1992 = vmatpush2.bf16.msra.mxu0 %v5304_v11  ;;  %v5399_v11 = vld [vmem:[#allocation7 + $0x428] ss:$16 sps:$4 sm:$0xff]  }
  0xd5   :  { %2058 = vmatpush1.bf16.msra.mxu1 %v5307_v12  ;;  %2084 = vmatprep.subr.bf16.mxu0 %v5317_v14  ;;  %v5404_v12 = vld [vmem:[#allocation7 + $0x30c] ss:$16 sps:$4 sm:$0xff]   ;;  %v5402_v14 = vld [vmem:[#allocation7 + $0x308] ss:$16 sps:$4 sm:$0xff]  }
  0xd6   :  { %2059 = vmatprep.subr.bf16.mxu1 %v5314_v13  ;;  %v5407_v13 = vld [vmem:[#allocation7 + $0x40c] ss:$16 sps:$4 sm:$0xff]  }
  0xd7   :  { %1994 = vmatmul.mubr.bf16.vlgmr.msra.gmra.mxu0 %v6249_v15 }
  0xd8   :  { %2085 = vmatpush1.bf16.msra.mxu0 %v5315_v18  ;;  %2116 = vmatprep.mubr.bf16.mxu0 %v6228_v51  ;;  %v5339_v51 = vld [vmem:[#allocation7 + $0x268] ss:$16 sps:$4 sm:$0xff]   ;;  %v5410_v18 = vld [vmem:[#allocation7 + $0x5ec] ss:$16 sps:$4 sm:$0xff]  }
  0xd9   :  { %2060 = vmatpush2.bf16.msra.mxu1 %v5312_v17  ;;  %2086 = vmatprep.subr.bf16.mxu0 %v5323_v20  ;;  %v5405_v17 = vld [vmem:[#allocation7 + $0x408] ss:$16 sps:$4 sm:$0xff]  }
  0xda   :  { %2061 = vmatprep.subr.bf16.mxu1 %v5320_v19  ;;  %v5413_v19 = vld [vmem:[#allocation7 + $0x6ec] ss:$16 sps:$4 sm:$0xff]   ;;  %v5408_v20 = vld [vmem:[#allocation7 + $0x5e8] ss:$16 sps:$4 sm:$0xff]  }
  0xdc   :  { %2087 = vmatpush1.bf16.msra.mxu0 %v5321_v22  ;;  %v5416_v22 = vld [vmem:[#allocation7 + $0x5cc] ss:$16 sps:$4 sm:$0xff]  }
  0xdd   :  { %2062 = vmatpush2.bf16.msra.mxu1 %v5318_v21  ;;  %2088 = vmatprep.subr.bf16.mxu0 %v5329_v24  ;;  %v5411_v21 = vld [vmem:[#allocation7 + $0x6e8] ss:$16 sps:$4 sm:$0xff]  }
  0xde   :  { %2063 = vmatprep.subr.bf16.mxu1 %v5326_v23  ;;  %v5419_v23 = vld [vmem:[#allocation7 + $0x6cc] ss:$16 sps:$4 sm:$0xff]   ;;  %v5414_v24 = vld [vmem:[#allocation7 + $0x5c8] ss:$16 sps:$4 sm:$0xff]  }
  0xe0   :  { %2089 = vmatpush1.bf16.msra.mxu0 %v5327_v26  ;;  %v5422_v26 = vld [vmem:[#allocation7 + $0x5ac] ss:$16 sps:$4 sm:$0xff]  }
  0xe1   :  { %2064 = vmatpush2.bf16.msra.mxu1 %v5324_v25  ;;  %2090 = vmatprep.subr.bf16.mxu0 %v5335_v28  ;;  %v5417_v25 = vld [vmem:[#allocation7 + $0x6c8] ss:$16 sps:$4 sm:$0xff]  }
  0xe2   :  { %2065 = vmatprep.subr.bf16.mxu1 %v5332_v27  ;;  %v5425_v27 = vld [vmem:[#allocation7 + $0x6ac] ss:$16 sps:$4 sm:$0xff]   ;;  %v5420_v28 = vld [vmem:[#allocation7 + $0x5a8] ss:$16 sps:$4 sm:$0xff]  }
  0xe4   :  { %2091 = vmatpush1.bf16.msra.mxu0 %v5333_v30  ;;  %v5428_v30 = vld [vmem:[#allocation7 + $0x58c] ss:$16 sps:$4 sm:$0xff]  }
  0xe5   :  { %2066 = vmatpush2.bf16.msra.mxu1 %v5330_v29  ;;  %2092 = vmatprep.subr.bf16.mxu0 %v5341_v32  ;;  %v5423_v29 = vld [vmem:[#allocation7 + $0x6a8] ss:$16 sps:$4 sm:$0xff]  }
  0xe6   :  { %2067 = vmatprep.subr.bf16.mxu1 %v5338_v31  ;;  %v5431_v31 = vld [vmem:[#allocation7 + $0x68c] ss:$16 sps:$4 sm:$0xff]   ;;  %v5426_v32 = vld [vmem:[#allocation7 + $0x588] ss:$16 sps:$4 sm:$0xff]  }
  0xe8   :  { %2093 = vmatpush1.bf16.msra.mxu0 %v5339_v51  ;;  %v5434_v51 = vld [vmem:[#allocation7 + $0x56c] ss:$16 sps:$4 sm:$0xff]  }
  0xe9   :  { %2068 = vmatpush2.bf16.msra.mxu1 %v5336_v33  ;;  %2094 = vmatprep.subr.bf16.mxu0 %v5347_v36  ;;  %v5429_v33 = vld [vmem:[#allocation7 + $0x688] ss:$16 sps:$4 sm:$0xff]  }
  0xea   :  { %2069 = vmatprep.subr.bf16.mxu1 %v5344_v34  ;;  %v5432_v34 = vld [vmem:[#allocation7 + $0x568] ss:$16 sps:$4 sm:$0xff]  }
  0xeb   :  { %v5435_v36 = vld [vmem:[#allocation7 + $0x668] ss:$16 sps:$4 sm:$0xff]  }
  0xec   :  { %2095 = vmatpush1.bf16.msra.mxu0 %v5345_v38  ;;  %v5443_v38 = vld [vmem:[#allocation7 + $0x64c] ss:$16 sps:$4 sm:$0xff]  }
  0xed   :  { %2070 = vmatpush2.bf16.msra.mxu1 %v5342_v37  ;;  %2096 = vmatprep.subr.bf16.mxu0 %v5353_v40  ;;  %v5440_v37 = vld [vmem:[#allocation7 + $0x54c] ss:$16 sps:$4 sm:$0xff]   ;;  %v5441_v40 = vld [vmem:[#allocation7 + $0x648] ss:$16 sps:$4 sm:$0xff]  }
  0xee   :  { %2071 = vmatprep.subr.bf16.mxu1 %v5350_v39  ;;  %v5438_v39 = vld [vmem:[#allocation7 + $0x548] ss:$16 sps:$4 sm:$0xff]  }
  0xf0   :  { %2097 = vmatpush1.bf16.msra.mxu0 %v5351_v42  ;;  %v5449_v42 = vld [vmem:[#allocation7 + $0x62c] ss:$16 sps:$4 sm:$0xff]  }
  0xf1   :  { %2072 = vmatpush2.bf16.msra.mxu1 %v5348_v41  ;;  %2098 = vmatprep.subr.bf16.mxu0 %v5359_v44  ;;  %v5446_v41 = vld [vmem:[#allocation7 + $0x52c] ss:$16 sps:$4 sm:$0xff]   ;;  %v5447_v44 = vld [vmem:[#allocation7 + $0x628] ss:$16 sps:$4 sm:$0xff]  }
  0xf2   :  { %2073 = vmatprep.subr.bf16.mxu1 %v5356_v43  ;;  %v5444_v43 = vld [vmem:[#allocation7 + $0x528] ss:$16 sps:$4 sm:$0xff]  }
  0xf4   :  { %2099 = vmatpush1.bf16.msra.mxu0 %v5357_v46  ;;  %v5455_v46 = vld [vmem:[#allocation7 + $0x60c] ss:$16 sps:$4 sm:$0xff]  }
  0xf5   :  { %2074 = vmatpush2.bf16.msra.mxu1 %v5354_v45  ;;  %2100 = vmatprep.subr.bf16.mxu0 %v5362_v48  ;;  %v5452_v45 = vld [vmem:[#allocation7 + $0x50c] ss:$16 sps:$4 sm:$0xff]   ;;  %v5450_v48 = vld [vmem:[#allocation7 + $0x508] ss:$16 sps:$4 sm:$0xff]  }
  0xf6   :  { %2125 = vmatprep.subr.bf16.mxu1 %v5365_v49  ;;  %v5453_v49 = vld [vmem:[#allocation7 + $0x608] ss:$16 sps:$4 sm:$0xff]  }
  0xf8   :  { %2076 = vmatmul.mubr.bf16.vlgmr.msra.gmra.mxu1 %v6232_v6  ;;  %2101 = vmatpush2.bf16.msra.mxu0 %v5360_v50  ;;  %v5381_v6 = vld [vmem:[#allocation7 + $0x488] ss:$16 sps:$4 sm:$0xff]   ;;  %v5458_v50 = vld [vmem:[#allocation8 + $0x74] ss:$8 sps:$4 sm:$0xff]  }
  0xf9   :  { %2126 = vmatpush1.bf16.msra.mxu1 %v5363_v52  ;;  %2102 = vmatprep.subr.bf16.mxu0 %v5368_v53  ;;  %v5456_v52 = vld [vmem:[#allocation8 + $0x70] ss:$8 sps:$4 sm:$0xff]   ;;  %v5461_v53 = vld [vmem:[#allocation8 + $0x64] ss:$8 sps:$4 sm:$0xff]  }
  0xfa   :  { %2127 = vmatprep.subr.bf16.mxu1 %v5371_v54  ;;  %2157 = vmatprep.mubr.bf16.mxu1 %v6243_v35  ;;  %v5390_v35 = vld [vmem:[#allocation7 + $0x348] ss:$16 sps:$4 sm:$0xff]  }
  0xfb   :  { %v5459_v54 = vld [vmem:[#allocation8 + $0x60] ss:$8 sps:$4 sm:$0xff]  }
  0xfc   :  { %2103 = vmatpush2.bf16.msra.mxu0 %v5366_v55  ;;  %v5936_v55 = vld [vmem:[#allocation2 + $0x18] ss:$0 sps:$4 sm:$0xff]  }
  0xfd   :  { %2128 = vmatpush1.bf16.msra.mxu1 %v5369_v56  ;;  %2104 = vmatprep.subr.bf16.mxu0 %v5374_v57  ;;  %v5464_v56 = vld [vmem:[#allocation8 + $0x54] ss:$8 sps:$4 sm:$0xff]   ;;  %v5462_v57 = vld [vmem:[#allocation8 + $0x50] ss:$8 sps:$4 sm:$0xff]  }
  0xfe   :  { %2129 = vmatprep.subr.bf16.mxu1 %v5377_v58  ;;  %v5467_v58 = vld [vmem:[#allocation8 + $0x44] ss:$8 sps:$4 sm:$0xff]  }
 0x100   :  { %2105 = vmatpush2.bf16.msra.mxu0 %v5372_v59  ;;  %v5504_v59 = vld [vmem:[#allocation8 + $0x170] ss:$8 sps:$4 sm:$0xff]  }
 0x101   :  { %2130 = vmatpush1.bf16.msra.mxu1 %v5375_v60  ;;  %2106 = vmatprep.subr.bf16.mxu0 %v5380_v61  ;;  %v5506_v60 = vld [vmem:[#allocation8 + $0x174] ss:$8 sps:$4 sm:$0xff]   ;;  %v5509_v61 = vld [vmem:[#allocation8 + $0x164] ss:$8 sps:$4 sm:$0xff]  }
 0x102   :  { %2131 = vmatprep.subr.bf16.mxu1 %v5383_v62  ;;  %v5465_v62 = vld [vmem:[#allocation8 + $0x40] ss:$8 sps:$4 sm:$0xff]  }
 0x104   :  { %2107 = vmatpush2.bf16.msra.mxu0 %v5378_v47  ;;  %v5470_v47 = vld [vmem:[#allocation8 + $0x34] ss:$8 sps:$4 sm:$0xff]  }
 0x105   :  { %2132 = vmatpush1.bf16.msra.mxu1 %v5381_v6  ;;  %2108 = vmatprep.subr.bf16.mxu0 %v5386_v63  ;;  %v5507_v6 = vld [vmem:[#allocation8 + $0x160] ss:$8 sps:$4 sm:$0xff]   ;;  %v5512_v63 = vld [vmem:[#allocation8 + $0x154] ss:$8 sps:$4 sm:$0xff]  }
 0x106   :  { %2133 = vmatprep.subr.bf16.mxu1 %v5389_v0  ;;  %v5510_v0 = vld [vmem:[#allocation8 + $0x150] ss:$8 sps:$4 sm:$0xff]  }
 0x108   :  { %2109 = vmatpush2.bf16.msra.mxu0 %v5384_v1  ;;  %v5473_v1 = vld [vmem:[#allocation8 + $0x24] ss:$8 sps:$4 sm:$0xff]  }
 0x109   :  { %2134 = vmatpush1.bf16.msra.mxu1 %v5387_v2  ;;  %2110 = vmatprep.subr.bf16.mxu0 %v5392_v3  ;;  %v5515_v2 = vld [vmem:[#allocation8 + $0x144] ss:$8 sps:$4 sm:$0xff]   ;;  %v5471_v3 = vld [vmem:[#allocation8 + $0x20] ss:$8 sps:$4 sm:$0xff]  }
 0x10a   :  { %2135 = vmatprep.subr.bf16.mxu1 %v5395_v4  ;;  %v5513_v4 = vld [vmem:[#allocation8 + $0x140] ss:$8 sps:$4 sm:$0xff]  }
 0x10c   :  { %2111 = vmatpush2.bf16.msra.mxu0 %v5390_v35  ;;  %v5476_v35 = vld [vmem:[#allocation8 + $0x14] ss:$8 sps:$4 sm:$0xff]  }
 0x10d   :  { %2136 = vmatpush1.bf16.msra.mxu1 %v5393_v5  ;;  %2112 = vmatprep.subr.bf16.mxu0 %v5398_v8  ;;  %v5518_v5 = vld [vmem:[#allocation8 + $0x134] ss:$8 sps:$4 sm:$0xff]   ;;  %v5474_v8 = vld [vmem:[#allocation8 + $0x10] ss:$8 sps:$4 sm:$0xff]  }
 0x10e   :  { %2137 = vmatprep.subr.bf16.mxu1 %v5401_v9  ;;  %v5516_v9 = vld [vmem:[#allocation8 + $0x130] ss:$8 sps:$4 sm:$0xff]  }
 0x110   :  { %2113 = vmatpush2.bf16.msra.mxu0 %v5396_v10  ;;  %v5479_v10 = vld [vmem:[#allocation8 + $0x4] ss:$8 sps:$4 sm:$0xff]  }
 0x111   :  { %2138 = vmatpush1.bf16.msra.mxu1 %v5399_v11  ;;  %2114 = vmatprep.subr.bf16.mxu0 %v5404_v12  ;;  %v5477_v11 = vld [vmem:[#allocation8] ss:$8 sps:$4 sm:$0xff]   ;;  %v5482_v12 = vld [vmem:[#allocation8 + $0xf4] ss:$8 sps:$4 sm:$0xff]  }
 0x112   :  { %2139 = vmatprep.subr.bf16.mxu1 %v5407_v13  ;;  %v5480_v13 = vld [vmem:[#allocation8 + $0xf0] ss:$8 sps:$4 sm:$0xff]  }
 0x114   :  { %2115 = vmatpush2.bf16.msra.mxu0 %v5402_v14  ;;  %v5485_v14 = vld [vmem:[#allocation8 + $0xe4] ss:$8 sps:$4 sm:$0xff]  }
 0x115   :  { %2140 = vmatpush1.bf16.msra.mxu1 %v5405_v17  ;;  %2166 = vmatprep.subr.bf16.mxu0 %v5413_v19  ;;  %v5521_v17 = vld [vmem:[#allocation8 + $0x124] ss:$8 sps:$4 sm:$0xff]   ;;  %v5519_v19 = vld [vmem:[#allocation8 + $0x120] ss:$8 sps:$4 sm:$0xff]  }
 0x116   :  { %2141 = vmatprep.subr.bf16.mxu1 %v5410_v18  ;;  %v5483_v18 = vld [vmem:[#allocation8 + $0xe0] ss:$8 sps:$4 sm:$0xff]  }
 0x117   :  { %2117 = vmatmul.mubr.bf16.vlgmr.msra.gmra.mxu0 %v6234_v7  ;;  %v5437_v7 = vld [vmem:[#allocation7 + $0x66c] ss:$16 sps:$4 sm:$0xff]  }
 0x118   :  { %2167 = vmatpush1.bf16.msra.mxu0 %v5411_v21  ;;  %2198 = vmatprep.mubr.bf16.mxu0 %v6142_v16 }
 0x119   :  { %2142 = vmatpush2.bf16.msra.mxu1 %v5408_v20  ;;  %2168 = vmatprep.subr.bf16.mxu0 %v5419_v23 }
 0x11a   :  { %2143 = vmatprep.subr.bf16.mxu1 %v5416_v22  ;;  %v5488_v22 = vld [vmem:[#allocation8 + $0xd4] ss:$8 sps:$4 sm:$0xff]  }
 0x11c   :  { %2169 = vmatpush1.bf16.msra.mxu0 %v5417_v25  ;;  %v5524_v25 = vld [vmem:[#allocation8 + $0x114] ss:$8 sps:$4 sm:$0xff]  }
 0x11d   :  { %2144 = vmatpush2.bf16.msra.mxu1 %v5414_v24  ;;  %2170 = vmatprep.subr.bf16.mxu0 %v5425_v27  ;;  %v5522_v27 = vld [vmem:[#allocation8 + $0x110] ss:$8 sps:$4 sm:$0xff]  }
 0x11e   :  { %2145 = vmatprep.subr.bf16.mxu1 %v5422_v26  ;;  %v5486_v26 = vld [vmem:[#allocation8 + $0xd0] ss:$8 sps:$4 sm:$0xff]  }
 0x120   :  { %2171 = vmatpush1.bf16.msra.mxu0 %v5423_v29 }
 0x121   :  { %2146 = vmatpush2.bf16.msra.mxu1 %v5420_v28  ;;  %2172 = vmatprep.subr.bf16.mxu0 %v5431_v31 }
 0x122   :  { %2147 = vmatprep.subr.bf16.mxu1 %v5428_v30 }
 0x124   :  { %2173 = vmatpush1.bf16.msra.mxu0 %v5429_v33  ;;  %v5525_v33 = vld [vmem:[#allocation8 + $0x100] ss:$8 sps:$4 sm:$0xff]  }
 0x125   :  { %2148 = vmatpush2.bf16.msra.mxu1 %v5426_v32  ;;  %2174 = vmatprep.subr.bf16.mxu0 %v5437_v7  ;;  %v5491_v32 = vld [vmem:[#allocation8 + $0xc4] ss:$8 sps:$4 sm:$0xff]   ;;  %v5530_v7 = vld [vmem:[#allocation8 + $0x1f4] ss:$8 sps:$4 sm:$0xff]  }
 0x126   :  { %2149 = vmatprep.subr.bf16.mxu1 %v5434_v51  ;;  %v5527_v51 = vld [vmem:[#allocation8 + $0x104] ss:$8 sps:$4 sm:$0xff]  }
 0x128   :  { %2175 = vmatpush1.bf16.msra.mxu0 %v5435_v36  ;;  %v5494_v36 = vld [vmem:[#allocation8 + $0xb4] ss:$8 sps:$4 sm:$0xff]  }
 0x129   :  { %2150 = vmatpush2.bf16.msra.mxu1 %v5432_v34  ;;  %2176 = vmatprep.subr.bf16.mxu0 %v5443_v38  ;;  %v5489_v34 = vld [vmem:[#allocation8 + $0xc0] ss:$8 sps:$4 sm:$0xff]   ;;  %v5533_v38 = vld [vmem:[#allocation8 + $0x1e4] ss:$8 sps:$4 sm:$0xff]  }
 0x12a   :  { %2151 = vmatprep.subr.bf16.mxu1 %v5440_v37  ;;  %v5528_v37 = vld [vmem:[#allocation8 + $0x1f0] ss:$8 sps:$4 sm:$0xff]  }
 0x12c   :  { %2177 = vmatpush1.bf16.msra.mxu0 %v5441_v40  ;;  %v5531_v40 = vld [vmem:[#allocation8 + $0x1e0] ss:$8 sps:$4 sm:$0xff]  }
 0x12d   :  { %2152 = vmatpush2.bf16.msra.mxu1 %v5438_v39  ;;  %2178 = vmatprep.subr.bf16.mxu0 %v5449_v42  ;;  %v5492_v39 = vld [vmem:[#allocation8 + $0xb0] ss:$8 sps:$4 sm:$0xff]   ;;  %v5536_v42 = vld [vmem:[#allocation8 + $0x1d4] ss:$8 sps:$4 sm:$0xff]  }
 0x12e   :  { %2153 = vmatprep.subr.bf16.mxu1 %v5446_v41  ;;  %v5497_v41 = vld [vmem:[#allocation8 + $0xa4] ss:$8 sps:$4 sm:$0xff]  }
 0x130   :  { %2179 = vmatpush1.bf16.msra.mxu0 %v5447_v44  ;;  %v5534_v44 = vld [vmem:[#allocation8 + $0x1d0] ss:$8 sps:$4 sm:$0xff]  }
 0x131   :  { %2154 = vmatpush2.bf16.msra.mxu1 %v5444_v43  ;;  %2180 = vmatprep.subr.bf16.mxu0 %v5455_v46  ;;  %v5495_v43 = vld [vmem:[#allocation8 + $0xa0] ss:$8 sps:$4 sm:$0xff]   ;;  %v5539_v46 = vld [vmem:[#allocation8 + $0x1c4] ss:$8 sps:$4 sm:$0xff]  }
 0x132   :  { %2155 = vmatprep.subr.bf16.mxu1 %v5452_v45  ;;  %v5500_v45 = vld [vmem:[#allocation8 + $0x94] ss:$8 sps:$4 sm:$0xff]  }
 0x134   :  { %2181 = vmatpush1.bf16.msra.mxu0 %v5453_v49  ;;  %v5537_v49 = vld [vmem:[#allocation8 + $0x1c0] ss:$8 sps:$4 sm:$0xff]  }
 0x135   :  { %2156 = vmatpush2.bf16.msra.mxu1 %v5450_v48  ;;  %2546 = vmatprep.subr.bf16.mxu0 %v5458_v50  ;;  %v5498_v48 = vld [vmem:[#allocation8 + $0x90] ss:$8 sps:$4 sm:$0xff]   ;;  %v5503_v50 = vld [vmem:[#allocation8 + $0x84] ss:$8 sps:$4 sm:$0xff]  }
 0x136   :  { %2587 = vmatprep.subr.bf16.mxu1 %v5506_v60  ;;  %v5546_v60 = vld [vmem:[#allocation8 + $0x190] ss:$8 sps:$4 sm:$0xff]  }
 0x137   :  { %2199 = vmatmul.mubr.bf16.vlgmr.msra.gmra.mxu0 %v5936_v55  ;;  %v5545_v55 = vld [vmem:[#allocation8 + $0x1a4] ss:$8 sps:$4 sm:$0xff]  }
 0x138   :  { %2158 = vmatmul.mubr.bf16.vlgmr.msra.gmra.mxu1 %v6249_v15  ;;  %2547 = vmatpush1.bf16.msra.mxu0 %v5456_v52  ;;  %v5468_v15 = vld [vmem:[#allocation8 + $0x30] ss:$8 sps:$4 sm:$0xff]   ;;  %v5542_v52 = vld [vmem:[#allocation8 + $0x1b4] ss:$8 sps:$4 sm:$0xff]  }
 0x139   :  { %2548 = vmatprep.subr.bf16.mxu0 %v5461_v53  ;;  %2588 = vmatpush1.bf16.msra.mxu1 %v5504_v59  ;;  %v5501_v53 = vld [vmem:[#allocation8 + $0x80] ss:$8 sps:$4 sm:$0xff]   ;;  %v5548_v59 = vld [vmem:[#allocation8 + $0x194] ss:$8 sps:$4 sm:$0xff]  }
 0x13a   :  { %2589 = vmatprep.subr.bf16.mxu1 %v5509_v61 }
 0x13c   :  { %2549 = vmatpush1.bf16.msra.mxu0 %v5459_v54  ;;  %v5540_v54 = vld [vmem:[#allocation8 + $0x1b0] ss:$8 sps:$4 sm:$0xff]  }
 0x13d   :  { %2550 = vmatprep.subr.bf16.mxu0 %v5464_v56  ;;  %2590 = vmatpush1.bf16.msra.mxu1 %v5507_v6  ;;  %v5543_v56 = vld [vmem:[#allocation8 + $0x1a0] ss:$8 sps:$4 sm:$0xff]  }
 0x13e   :  { %2591 = vmatprep.subr.bf16.mxu1 %v5512_v63  ;;  %v5549_v6 = vld [vmem:[#allocation8 + $0x180] ss:$8 sps:$4 sm:$0xff]   ;;  %v714_v63 = vlaneseq }
 0x140   :  { %2551 = vmatpush1.bf16.msra.mxu0 %v5462_v57 }
 0x141   :  { %2552 = vmatprep.subr.bf16.mxu0 %v5467_v58  ;;  %2592 = vmatpush1.bf16.msra.mxu1 %v5510_v0 }
 0x142   :  { %2593 = vmatprep.subr.bf16.mxu1 %v5515_v2 }
 0x144   :  { %2553 = vmatpush1.bf16.msra.mxu0 %v5465_v62 }
 0x145   :  { %2554 = vmatprep.subr.bf16.mxu0 %v5470_v47  ;;  %2594 = vmatpush1.bf16.msra.mxu1 %v5513_v4  ;;  %v5551_v47 = vld [vmem:[#allocation8 + $0x184] ss:$8 sps:$4 sm:$0xff]  }
 0x146   :  { %2595 = vmatprep.subr.bf16.mxu1 %v5518_v5 }
 0x148   :  { %2555 = vmatpush1.bf16.msra.mxu0 %v5468_v15  ;;  %v6266_v15 = vshrl.u32 %v714_v63, 7  ;;  %v5566_v63 = vld [vmem:[#allocation10 + $0xa4] ss:$16 sps:$4 sm:$0xff]  }
 0x149   :  { %2556 = vmatprep.subr.bf16.mxu0 %v5473_v1  ;;  %2596 = vmatpush1.bf16.msra.mxu1 %v5516_v9  ;;  %v353_v1 = vld [vmem:[%s6354_s3] sm:$0xf] }
 0x14a   :  { %2597 = vmatprep.subr.bf16.mxu1 %v5521_v17  ;;  %v6269_v0 = vsub.s32 0, %v6266_v15  ;;  %v6275_v2 = vsub.s32 1, %v6266_v15 }
 0x14c   :  { %2557 = vmatpush1.bf16.msra.mxu0 %v5471_v3  ;;  %v717_v3 = vrot.slane %v353_v1, %v6269_v0  ;;  %v721_v4 = vrot.slane %v353_v1, %v6275_v2 }
 0x14d   :  { %2558 = vmatprep.subr.bf16.mxu0 %v5476_v35  ;;  %2598 = vmatpush1.bf16.msra.mxu1 %v5519_v19 }
 0x14e   :  { %2599 = vmatprep.subr.bf16.mxu1 %v5524_v25 }
 0x150   :  { %2559 = vmatpush1.bf16.msra.mxu0 %v5474_v8 }
 0x151   :  { %2560 = vmatprep.subr.bf16.mxu0 %v5479_v10  ;;  %2600 = vmatpush1.bf16.msra.mxu1 %v5522_v27 }
 0x152   :  { %2601 = vmatprep.subr.bf16.mxu1 %v5527_v51  ;;  %v5557_v51 = vld [vmem:[#allocation10 + $0xec] ss:$16 sps:$4 sm:$0xff]  }
 0x154   :  { %2561 = vmatpush1.bf16.msra.mxu0 %v5477_v11 }
 0x155   :  { %2562 = vmatprep.subr.bf16.mxu0 %v5482_v12  ;;  %2602 = vmatpush1.bf16.msra.mxu1 %v5525_v33  ;;  %v5554_v33 = vld [vmem:[#allocation10 + $0xe4] ss:$16 sps:$4 sm:$0xff]  }
 0x156   :  { %2603 = vmatprep.subr.bf16.mxu1 %v5530_v7  ;;  %v6285_v7 = vsub.s32 2, %v6266_v15 }
 0x157   :  { %v6258_v20 = vpop.f32.mrf.mxu0 }
 0x158   :  { %v6260_v21 = vpop.f32.mrf.mxu1  ;;  %2563 = vmatpush2.bf16.msra.mxu0 %v5480_v13  ;;  %v1914_v35 = vadd.f32 %v6258_v20, %v717_v3  ;;  %v5564_v3 = vld [vmem:[#allocation10 + $0xa0] ss:$16 sps:$4 sm:$0xff]  }
 0x159   :  { %v6262_v23 = vpop.f32.mrf.mxu0  ;;  %2564 = vmatprep.subr.bf16.mxu0 %v5485_v14  ;;  %2604 = vmatpush2.bf16.msra.mxu1 %v5528_v37 }
 0x15a   :  { %v6264_v24 = vpop.f32.mrf.mxu1  ;;  %2605 = vmatprep.subr.bf16.mxu1 %v5533_v38  ;;  %v1916_v5 = vadd.f32 %v6262_v23, %v721_v4  ;;  %v1955_v8 = vadd.f32 %v6260_v21, %v1914_v35  ;;  %v5567_v4 = vld [vmem:[#allocation10 + $0xa8] ss:$16 sps:$4 sm:$0xff]   ;;  %v5572_v35 = vld [vmem:[#allocation10 + $0x84] ss:$16 sps:$4 sm:$0xff]  }
 0x15b   :  { %v1917_v28 = vpop.f32.mrf.mxu0 }
 0x15c   :  { %v1958_v29 = vpop.f32.mrf.mxu1  ;;  %2565 = vmatpush2.bf16.msra.mxu0 %v5483_v18  ;;  %v1957_v10 = vadd.f32 %v6264_v24, %v1916_v5  ;;  %v5575_v5 = vld [vmem:[#allocation10 + $0x8c] ss:$16 sps:$4 sm:$0xff]  }
 0x15d   :  { %v1918_v30 = vpop.f32.mrf.mxu0  ;;  %2566 = vmatprep.subr.bf16.mxu0 %v5488_v22  ;;  %2606 = vmatpush2.bf16.msra.mxu1 %v5531_v40 }
 0x15e   :  { %v1959_v31 = vpop.f32.mrf.mxu1  ;;  %2607 = vmatprep.subr.bf16.mxu1 %v5536_v42 }
 0x160   :  { %2567 = vmatpush2.bf16.msra.mxu0 %v5486_v26 }
 0x161   :  { %2568 = vmatprep.subr.bf16.mxu0 %v5491_v32  ;;  %2608 = vmatpush2.bf16.msra.mxu1 %v5534_v44  ;;  %v5552_v32 = vld [vmem:[#allocation10 + $0xe0] ss:$16 sps:$4 sm:$0xff]  }
 0x162   :  { %2609 = vmatprep.subr.bf16.mxu1 %v5539_v46 }
 0x164   :  { %2569 = vmatpush2.bf16.msra.mxu0 %v5489_v34  ;;  %v6288_v34 = vsub.s32 3, %v6266_v15 }
 0x165   :  { %2570 = vmatprep.subr.bf16.mxu0 %v5494_v36  ;;  %2610 = vmatpush2.bf16.msra.mxu1 %v5537_v49  ;;  %v725_v36 = vrot.slane %v353_v1, %v6285_v7 }
 0x166   :  { %2611 = vmatprep.subr.bf16.mxu1 %v5542_v52  ;;  %v729_v37 = vrot.slane %v353_v1, %v6288_v34  ;;  %v5569_v1 = vld [vmem:[#allocation10 + $0xac] ss:$16 sps:$4 sm:$0xff]  }
 0x168   :  { %2571 = vmatpush2.bf16.msra.mxu0 %v5492_v39 }
 0x169   :  { %2572 = vmatprep.subr.bf16.mxu0 %v5497_v41  ;;  %2612 = vmatpush2.bf16.msra.mxu1 %v5540_v54 }
 0x16a   :  { %2613 = vmatprep.subr.bf16.mxu1 %v5545_v55 }
 0x16c   :  { %2573 = vmatpush2.bf16.msra.mxu0 %v5495_v43 }
 0x16d   :  { %2574 = vmatprep.subr.bf16.mxu0 %v5500_v45  ;;  %2614 = vmatpush2.bf16.msra.mxu1 %v5543_v56 }
 0x16e   :  { %2615 = vmatprep.subr.bf16.mxu1 %v5548_v59  ;;  %v5555_v59 = vld [vmem:[#allocation10 + $0xe8] ss:$16 sps:$4 sm:$0xff]  }
 0x170   :  { %2575 = vmatpush2.bf16.msra.mxu0 %v5498_v48 }
 0x171   :  { %2576 = vmatprep.subr.bf16.mxu0 %v5503_v50  ;;  %2616 = vmatpush2.bf16.msra.mxu1 %v5546_v60 }
 0x172   :  { %2617 = vmatprep.subr.bf16.mxu1 %v5551_v47  ;;  %v5558_v47 = vld [vmem:[#allocation10 + $0xc0] ss:$16 sps:$4 sm:$0xff]  }
 0x174   :  { %2577 = vmatpush2.bf16.msra.mxu0 %v5501_v53 }
 0x175   :  { %2618 = vmatpush2.bf16.msra.mxu1 %v5549_v6  ;;  %2816 = vmatprep.subr.bf16.mxu0 %v5554_v33  ;;  %v5561_v6 = vld [vmem:[#allocation10 + $0xc8] ss:$16 sps:$4 sm:$0xff]   ;;  %v418_v33 = vld [vmem:[%s6356_s5] sm:$0x3] }
 0x176   :  { %2857 = vmatprep.subr.bf16.mxu1 %v5557_v51  ;;  %v2219_v51 = vrot.slane %v418_v33, %v6269_v0 }
 0x178   :  { %v2036_v57 = vpop.f32.mrf.mxu1 }
 0x17a   :  { %v2038_v58 = vpop.f32.mrf.mxu1 }
 0x17c   :  { %v2040_v61 = vpop.f32.mrf.mxu1 }
 0x17d   :  { %v5560_v61 = vld [vmem:[#allocation10 + $0xc4] ss:$16 sps:$4 sm:$0xff]  }
 0x17e   :  { %v2041_v62 = vpop.f32.mrf.mxu1 }
 0x17f   :  { %v5563_v62 = vld [vmem:[#allocation10 + $0xcc] ss:$16 sps:$4 sm:$0xff]  }
 0x197   :  { %v1995_v9 = vpop.f32.mrf.mxu0 }
 0x198   :  { %v1996_v11 = vadd.f32 %v1995_v9, %v1955_v8  ;;  %v5570_v8 = vld [vmem:[#allocation10 + $0x80] ss:$16 sps:$4 sm:$0xff]   ;;  %v5578_v9 = vld [vmem:[#allocation10 + $0x64] ss:$16 sps:$4 sm:$0xff]  }
 0x199   :  { %v1997_v12 = vpop.f32.mrf.mxu0 }
 0x19a   :  { %v2037_v13 = vadd.f32 %v2036_v57, %v1996_v11  ;;  %v1998_v14 = vadd.f32 %v1997_v12, %v1957_v10  ;;  %v5576_v10 = vld [vmem:[#allocation10 + $0x60] ss:$16 sps:$4 sm:$0xff]   ;;  %v5579_v11 = vld [vmem:[#allocation10 + $0x68] ss:$16 sps:$4 sm:$0xff]   ;;  %v5581_v12 = vld [vmem:[#allocation10 + $0x6c] ss:$16 sps:$4 sm:$0xff]  }
 0x19b   :  { %v1999_v17 = vpop.f32.mrf.mxu0 }
 0x19c   :  { %v2039_v18 = vadd.f32 %v2038_v58, %v1998_v14  ;;  %v2207_v19 = vmax.f32 %v2037_v13, 0.0  ;;  %v5584_v13 = vld [vmem:[#allocation10 + $0x44] ss:$16 sps:$4 sm:$0xff]   ;;  %v5587_v14 = vld [vmem:[#allocation10 + $0x4c] ss:$16 sps:$4 sm:$0xff]  }
 0x19d   :  { %v2000_v22 = vpop.f32.mrf.mxu0  ;;  %v5582_v17 = vld [vmem:[#allocation10 + $0x40] ss:$16 sps:$4 sm:$0xff]  }
 0x19e   :  { %v2208_v25 = vmax.f32 %v2039_v18, 0.0  ;;  %v2211_v27 = vpack.c.bf16 %v2207_v19, %v2207_v19  ;;  %v5585_v18 = vld [vmem:[#allocation10 + $0x48] ss:$16 sps:$4 sm:$0xff]   ;;  %v5590_v19 = vld [vmem:[#allocation10 + $0x24] ss:$16 sps:$4 sm:$0xff]  }
 0x19f   :  { %v5593_v22 = vld [vmem:[#allocation10 + $0x2c] ss:$16 sps:$4 sm:$0xff]  }
 0x1a0   :  { %v2212_v26 = vpack.c.bf16 %v2208_v25, %v2208_v25  ;;  %v5588_v25 = vld [vmem:[#allocation10 + $0x20] ss:$16 sps:$4 sm:$0xff]  }
 0x1a2   :  { %2578 = vmatprep.mubr.bf16.mxu0 %v2212_v26  ;;  %v5591_v26 = vld [vmem:[#allocation10 + $0x28] ss:$16 sps:$4 sm:$0xff]  }
 0x1a3   :  { %2579 = vmatmul.mubr.bf16.vlgmr.msra.gmra.mxu0 %v2211_v27  ;;  %v5596_v27 = vld [vmem:[#allocation10 + $0x4] ss:$16 sps:$4 sm:$0xff]  }
 0x1a4   :  { %2848 = vmatprep.mubr.bf16.mxu0 %v6142_v16  ;;  %2817 = vmatpush1.bf16.msra.mxu0 %v5552_v32 }
 0x1a5   :  { %2818 = vmatprep.subr.bf16.mxu0 %v5560_v61  ;;  %v5617_v61 = vld [vmem:[#allocation13 + $0x49c] ss:$28 sps:$4 sm:$0xff]  }
 0x1a8   :  { %2819 = vmatpush1.bf16.msra.mxu0 %v5558_v47  ;;  %v5615_v47 = vld [vmem:[#allocation13 + $0x498] ss:$28 sps:$4 sm:$0xff]  }
 0x1a9   :  { %2820 = vmatprep.subr.bf16.mxu0 %v5566_v63  ;;  %v5623_v63 = vld [vmem:[#allocation13 + $0x464] ss:$28 sps:$4 sm:$0xff]  }
 0x1ac   :  { %2821 = vmatpush1.bf16.msra.mxu0 %v5564_v3  ;;  %v5621_v3 = vld [vmem:[#allocation13 + $0x460] ss:$28 sps:$4 sm:$0xff]  }
 0x1ad   :  { %2822 = vmatprep.subr.bf16.mxu0 %v5572_v35  ;;  %v5629_v35 = vld [vmem:[#allocation13 + $0x42c] ss:$28 sps:$4 sm:$0xff]  }
 0x1b0   :  { %2823 = vmatpush1.bf16.msra.mxu0 %v5570_v8  ;;  %v5627_v8 = vld [vmem:[#allocation13 + $0x428] ss:$28 sps:$4 sm:$0xff]  }
 0x1b1   :  { %2824 = vmatprep.subr.bf16.mxu0 %v5578_v9  ;;  %v5635_v9 = vld [vmem:[#allocation13 + $0x3f4] ss:$28 sps:$4 sm:$0xff]  }
 0x1b4   :  { %2825 = vmatpush1.bf16.msra.mxu0 %v5576_v10  ;;  %v5630_v10 = vld [vmem:[#allocation13 + $0x70] ss:$28 sps:$4 sm:$0xff]  }
 0x1b5   :  { %2826 = vmatprep.subr.bf16.mxu0 %v5584_v13  ;;  %v5641_v13 = vld [vmem:[#allocation13 + $0x3bc] ss:$28 sps:$4 sm:$0xff]  }
 0x1b8   :  { %v2077_v20 = vpop.f32.mrf.mxu1  ;;  %2827 = vmatpush1.bf16.msra.mxu0 %v5582_v17  ;;  %v5639_v17 = vld [vmem:[#allocation13 + $0x3b8] ss:$28 sps:$4 sm:$0xff]  }
 0x1b9   :  { %v2078_v38 = vadd.f32 %v2077_v20, %v725_v36  ;;  %2828 = vmatprep.subr.bf16.mxu0 %v5590_v19  ;;  %v5599_v20 = vld [vmem:[#allocation10 + $0xc] ss:$16 sps:$4 sm:$0xff]   ;;  %v2223_v36 = vrot.slane %v418_v33, %v6275_v2  ;;  %v5647_v19 = vld [vmem:[#allocation13 + $0x384] ss:$28 sps:$4 sm:$0xff]  }
 0x1ba   :  { %v2079_v21 = vpop.f32.mrf.mxu1  ;;  %v5663_v33 = vld [vmem:[#allocation13 + $0x658] ss:$28 sps:$4 sm:$0xff]  }
 0x1bb   :  { %v2080_v39 = vadd.f32 %v2079_v21, %v729_v37  ;;  %v5594_v21 = vld [vmem:[#allocation10] ss:$16 sps:$4 sm:$0xff]  }
 0x1bc   :  { %v2081_v23 = vpop.f32.mrf.mxu1  ;;  %2829 = vmatpush1.bf16.msra.mxu0 %v5588_v25  ;;  %v5645_v25 = vld [vmem:[#allocation13 + $0x380] ss:$28 sps:$4 sm:$0xff]  }
 0x1bd   :  { %v5597_v23 = vld [vmem:[#allocation10 + $0x8] ss:$16 sps:$4 sm:$0xff]   ;;  %2830 = vmatprep.subr.bf16.mxu0 %v5596_v27  ;;  %v5653_v27 = vld [vmem:[#allocation13 + $0x6cc] ss:$28 sps:$4 sm:$0xff]  }
 0x1be   :  { %v2082_v28 = vpop.f32.mrf.mxu1 }
 0x1bf   :  { %v5602_v28 = vld [vmem:[#allocation13 + $0x18c] ss:$28 sps:$4 sm:$0xff]  }
 0x1c0   :  { %2831 = vmatpush1.bf16.msra.mxu0 %v5594_v21  ;;  %v5651_v21 = vld [vmem:[#allocation13 + $0x6c8] ss:$28 sps:$4 sm:$0xff]  }
 0x1c1   :  { %4094 = vmatprep.subr.bf16.mxu0 %v5602_v28  ;;  %v5659_v28 = vld [vmem:[#allocation13 + $0x694] ss:$28 sps:$4 sm:$0xff]  }
 0x1d7   :  { %v2118_v24 = vpop.f32.mrf.mxu0 }
 0x1d8   :  { %v2119_v40 = vadd.f32 %v2118_v24, %v2078_v38  ;;  %v5605_v24 = vld [vmem:[#allocation13 + $0x50c] ss:$28 sps:$4 sm:$0xff]  }
 0x1d9   :  { %v2120_v29 = vpop.f32.mrf.mxu0 }
 0x1da   :  { %v2121_v43 = vadd.f32 %v2120_v29, %v2080_v39 }
 0x1db   :  { %v2122_v30 = vpop.f32.mrf.mxu0 }
 0x1dd   :  { %v2123_v31 = vpop.f32.mrf.mxu0 }
 0x1f7   :  { %v2200_v42 = vpop.f32.mrf.mxu0 }
 0x1f8   :  { %v2159_v41 = vpop.f32.mrf.mxu1 }
 0x1f9   :  { %v2160_v44 = vadd.f32 %v2159_v41, %v2119_v40  ;;  %v2202_v46 = vpop.f32.mrf.mxu0 }
 0x1fa   :  { %v2161_v45 = vpop.f32.mrf.mxu1 }
 0x1fb   :  { %v2201_v48 = vadd.f32 %v2200_v42, %v2160_v44  ;;  %v2162_v49 = vadd.f32 %v2161_v45, %v2121_v43  ;;  %v2204_v52 = vpop.f32.mrf.mxu0 }
 0x1fc   :  { %v2163_v50 = vpop.f32.mrf.mxu1 }
 0x1fd   :  { %v2203_v53 = vadd.f32 %v2202_v46, %v2162_v49  ;;  %v2209_v54 = vmax.f32 %v2201_v48, 0.0  ;;  %v2205_v56 = vpop.f32.mrf.mxu0  ;;  %v2628_v48 = vld [vmem:[#allocation5] sm:$0xff] }
 0x1fe   :  { %v2164_v55 = vpop.f32.mrf.mxu1  ;;  %v5608_v56 = vld [vmem:[#allocation13 + $0x154] ss:$28 sps:$4 sm:$0xff]  }
 0x1ff   :  { %v2210_v57 = vmax.f32 %v2203_v53, 0.0  ;;  %v2213_v60 = vpack.c.bf16 %v2209_v54, %v2209_v54  ;;  %v5600_v53 = vld [vmem:[#allocation13 + $0x188] ss:$28 sps:$4 sm:$0xff]  }
 0x200   :  { %v5603_v54 = vld [vmem:[#allocation13 + $0x508] ss:$28 sps:$4 sm:$0xff]  }
 0x201   :  { %v2214_v58 = vpack.c.bf16 %v2210_v57, %v2210_v57  ;;  %v5611_v57 = vld [vmem:[#allocation13 + $0x4d4] ss:$28 sps:$4 sm:$0xff]  }
 0x203   :  { %2619 = vmatprep.mubr.bf16.mxu1 %v2214_v58  ;;  %v5606_v58 = vld [vmem:[#allocation13 + $0x150] ss:$28 sps:$4 sm:$0xff]  }
 0x204   :  { %2620 = vmatmul.mubr.bf16.vlgmr.msra.gmra.mxu1 %v2213_v60  ;;  %v5614_v60 = vld [vmem:[#allocation13 + $0x11c] ss:$28 sps:$4 sm:$0xff]  }
 0x205   :  { %2858 = vmatpush1.bf16.msra.mxu1 %v5555_v59  ;;  %2889 = vmatprep.mubr.bf16.mxu1 %v6142_v16  ;;  %v5573_v16 = vld [vmem:[#allocation10 + $0x88] ss:$16 sps:$4 sm:$0xff]   ;;  %v5609_v59 = vld [vmem:[#allocation13 + $0x4d0] ss:$28 sps:$4 sm:$0xff]  }
 0x206   :  { %2859 = vmatprep.subr.bf16.mxu1 %v5563_v62  ;;  %v5612_v62 = vld [vmem:[#allocation13 + $0x118] ss:$28 sps:$4 sm:$0xff]  }
 0x209   :  { %2860 = vmatpush1.bf16.msra.mxu1 %v5561_v6  ;;  %v5620_v6 = vld [vmem:[#allocation13 + $0xe4] ss:$28 sps:$4 sm:$0xff]  }
 0x20a   :  { %2861 = vmatprep.subr.bf16.mxu1 %v5569_v1  ;;  %v5618_v1 = vld [vmem:[#allocation13 + $0xe0] ss:$28 sps:$4 sm:$0xff]  }
 0x20d   :  { %2862 = vmatpush1.bf16.msra.mxu1 %v5567_v4  ;;  %v5626_v4 = vld [vmem:[#allocation13 + $0xac] ss:$28 sps:$4 sm:$0xff]  }
 0x20e   :  { %2863 = vmatprep.subr.bf16.mxu1 %v5575_v5  ;;  %v5624_v5 = vld [vmem:[#allocation13 + $0xa8] ss:$28 sps:$4 sm:$0xff]  }
 0x211   :  { %2864 = vmatpush1.bf16.msra.mxu1 %v5573_v16  ;;  %v5632_v16 = vld [vmem:[#allocation13 + $0x74] ss:$28 sps:$4 sm:$0xff]  }
 0x212   :  { %2865 = vmatprep.subr.bf16.mxu1 %v5581_v12  ;;  %v5638_v12 = vld [vmem:[#allocation13 + $0x3c] ss:$28 sps:$4 sm:$0xff]  }
 0x215   :  { %2866 = vmatpush1.bf16.msra.mxu1 %v5579_v11  ;;  %v5633_v11 = vld [vmem:[#allocation13 + $0x3f0] ss:$28 sps:$4 sm:$0xff]  }
 0x216   :  { %2867 = vmatprep.subr.bf16.mxu1 %v5587_v14  ;;  %v5636_v14 = vld [vmem:[#allocation13 + $0x38] ss:$28 sps:$4 sm:$0xff]  }
 0x219   :  { %2868 = vmatpush1.bf16.msra.mxu1 %v5585_v18  ;;  %v5644_v18 = vld [vmem:[#allocation13 + $0x4] ss:$28 sps:$4 sm:$0xff]  }
 0x21a   :  { %2869 = vmatprep.subr.bf16.mxu1 %v5593_v22  ;;  %v5642_v22 = vld [vmem:[#allocation13] ss:$28 sps:$4 sm:$0xff]  }
 0x21d   :  { %2870 = vmatpush1.bf16.msra.mxu1 %v5591_v26  ;;  %v5650_v26 = vld [vmem:[#allocation13 + $0x34c] ss:$28 sps:$4 sm:$0xff]  }
 0x21e   :  { %2871 = vmatprep.subr.bf16.mxu1 %v5599_v20  ;;  %v5648_v20 = vld [vmem:[#allocation13 + $0x348] ss:$28 sps:$4 sm:$0xff]  }
 0x221   :  { %2872 = vmatpush1.bf16.msra.mxu1 %v5597_v23  ;;  %v5656_v23 = vld [vmem:[#allocation13 + $0x314] ss:$28 sps:$4 sm:$0xff]  }
 0x222   :  { %4135 = vmatprep.subr.bf16.mxu1 %v5605_v24  ;;  %v5654_v24 = vld [vmem:[#allocation13 + $0x310] ss:$28 sps:$4 sm:$0xff]  }
 0x263   :  { %v2580_v29 = vpop.f32.mrf.mxu0 }
 0x264   :  { %v2581_v37 = vadd.f32 %v2580_v29, %v2219_v51  ;;  %v5657_v29 = vld [vmem:[#allocation13 + $0x690] ss:$28 sps:$4 sm:$0xff]   ;;  %v5668_v51 = vld [vmem:[#allocation13 + $0x2a4] ss:$28 sps:$4 sm:$0xff]  }
 0x265   :  { %v2582_v30 = vpop.f32.mrf.mxu0 }
 0x266   :  { %v2583_v39 = vadd.f32 %v2582_v30, %v2223_v36  ;;  %v5662_v30 = vld [vmem:[#allocation13 + $0x2dc] ss:$28 sps:$4 sm:$0xff]   ;;  %v5671_v36 = vld [vmem:[#allocation13 + $0x624] ss:$28 sps:$4 sm:$0xff]  }
 0x267   :  { %v2584_v31 = vpop.f32.mrf.mxu0 }
 0x268   :  { %v5665_v31 = vld [vmem:[#allocation13 + $0x65c] ss:$28 sps:$4 sm:$0xff]  }
 0x269   :  { %v2585_v32 = vpop.f32.mrf.mxu0 }
 0x26a   :  { %v5660_v32 = vld [vmem:[#allocation13 + $0x2d8] ss:$28 sps:$4 sm:$0xff]  }
 0x2c4   :  { %v2621_v38 = vpop.f32.mrf.mxu1 }
 0x2c5   :  { %v2622_v40 = vadd.f32 %v2621_v38, %v2581_v37  ;;  %v5666_v37 = vld [vmem:[#allocation13 + $0x2a0] ss:$28 sps:$4 sm:$0xff]  }
 0x2c6   :  { %v2623_v41 = vpop.f32.mrf.mxu1  ;;  %v5669_v38 = vld [vmem:[#allocation13 + $0x620] ss:$28 sps:$4 sm:$0xff]  }
 0x2c7   :  { %4460 = vst [vmem:[#allocation15] sm:$0xff] %v2622_v40  ;;  %v2624_v42 = vadd.f32 %v2623_v41, %v2583_v39  ;;  %v5674_v39 = vld [vmem:[#allocation13 + $0x26c] ss:$28 sps:$4 sm:$0xff]  }
 0x2c8   :  { %v2625_v43 = vpop.f32.mrf.mxu1  ;;  %v5672_v41 = vld [vmem:[#allocation13 + $0x268] ss:$28 sps:$4 sm:$0xff]  }
 0x2c9   :  { %v2629_v44 = vmul.f32 0.5, %v2624_v42  ;;  %4461 = vst [vmem:[#allocation15 + $0x8] sm:$0xff] %v2624_v42  ;;  %v5675_v42 = vld [vmem:[#allocation13 + $0x5e8] ss:$28 sps:$4 sm:$0xff]   ;;  %v5680_v43 = vld [vmem:[#allocation13 + $0x234] ss:$28 sps:$4 sm:$0xff]  }
 0x2ca   :  { %v2626_v45 = vpop.f32.mrf.mxu1 }
 0x2cb   :  { %v2630_v46 = vmul.f32 1.442695, %v2629_v44  ;;  %v5683_v44 = vld [vmem:[#allocation13 + $0x5b4] ss:$28 sps:$4 sm:$0xff]  }
 0x2cc   :  { %v5678_v45 = vld [vmem:[#allocation13 + $0x230] ss:$28 sps:$4 sm:$0xff]  }
 0x2cd   :  { %5920 = vpow2.f32 %v2630_v46  ;;  %v5681_v46 = vld [vmem:[#allocation13 + $0x5b0] ss:$28 sps:$4 sm:$0xff]  }
 0x2da   :  { %v5921_v49 = vpop.eup %5920 }
 0x2db   :  { %v2632_v50 = vmul.f32 %v5921_v49, %v2628_v48  ;;  %v5686_v48 = vld [vmem:[#allocation13 + $0x1fc] ss:$28 sps:$4 sm:$0xff]  }
 0x2dc   :  { %v5689_v49 = vld [vmem:[#allocation13 + $0x57c] ss:$28 sps:$4 sm:$0xff]  }
 0x2dd   :  { %v2633_v52 = vadd.f32 %v2632_v50, %v2622_v40  ;;  %v5677_v40 = vld [vmem:[#allocation13 + $0x5ec] ss:$28 sps:$4 sm:$0xff]   ;;  %v5684_v50 = vld [vmem:[#allocation13 + $0x1f8] ss:$28 sps:$4 sm:$0xff]  }
 0x2df   :  { %v2634_v55 = vpack.c.bf16 %v2633_v52, %v2633_v52  ;;  %v5687_v52 = vld [vmem:[#allocation13 + $0x578] ss:$28 sps:$4 sm:$0xff]  }
 0x2e1   :  { %2849 = vmatmul.mubr.bf16.vlgmr.msra.gmra.mxu0 %v2634_v55  ;;  %2890 = vmatmul.mubr.bf16.vlgmr.msra.gmra.mxu1 %v2634_v55  ;;  %v5690_v55 = vld [vmem:[#allocation13 + $0x1c0] ss:$28 sps:$4 sm:$0xff]  }
 0x2e2   :  { %4095 = vmatpush1.bf16.msra.mxu0 %v5600_v53  ;;  %4136 = vmatpush1.bf16.msra.mxu1 %v5603_v54  ;;  %v5692_v53 = vld [vmem:[#allocation13 + $0x1c4] ss:$28 sps:$4 sm:$0xff]  }
 0x2e3   :  { %4096 = vmatprep.subr.bf16.mxu0 %v5608_v56  ;;  %4137 = vmatprep.subr.bf16.mxu1 %v5611_v57  ;;  %v5695_v54 = vld [vmem:[#allocation13 + $0x544] ss:$28 sps:$4 sm:$0xff]   ;;  %v5698_v57 = vld [vmem:[#allocation13 + $0x194] ss:$28 sps:$4 sm:$0xff]  }
 0x2e4   :  { %v5693_v56 = vld [vmem:[#allocation13 + $0x540] ss:$28 sps:$4 sm:$0xff]  }
 0x2e6   :  { %4097 = vmatpush1.bf16.msra.mxu0 %v5606_v58  ;;  %4138 = vmatpush1.bf16.msra.mxu1 %v5609_v59  ;;  %v5701_v58 = vld [vmem:[#allocation13 + $0x514] ss:$28 sps:$4 sm:$0xff]   ;;  %v451_v59 = vld [vmem:[#allocation11] sm:$0xf] }
 0x2e7   :  { %4098 = vmatprep.subr.bf16.mxu0 %v5614_v60  ;;  %4139 = vmatprep.subr.bf16.mxu1 %v5617_v61  ;;  %v2639_v60 = vrot.slane %v451_v59, %v6269_v0  ;;  %v2647_v61 = vrot.slane %v451_v59, %v6285_v7 }
 0x2ea   :  { %4099 = vmatpush1.bf16.msra.mxu0 %v5612_v62  ;;  %4140 = vmatpush1.bf16.msra.mxu1 %v5615_v47  ;;  %v2643_v62 = vrot.slane %v451_v59, %v6275_v2  ;;  %v2651_v47 = vrot.slane %v451_v59, %v6288_v34  ;;  %v5752_v59 = vld [vmem:[#allocation13 + $0x31c] ss:$28 sps:$4 sm:$0xff]  }
 0x2eb   :  { %4100 = vmatprep.subr.bf16.mxu0 %v5620_v6  ;;  %4141 = vmatprep.subr.bf16.mxu1 %v5623_v63 }
 0x2ee   :  { %4101 = vmatpush1.bf16.msra.mxu0 %v5618_v1  ;;  %4142 = vmatpush1.bf16.msra.mxu1 %v5621_v3 }
 0x2ef   :  { %4102 = vmatprep.subr.bf16.mxu0 %v5626_v4  ;;  %4143 = vmatprep.subr.bf16.mxu1 %v5629_v35 }
 0x2f2   :  { %4103 = vmatpush1.bf16.msra.mxu0 %v5624_v5  ;;  %4144 = vmatpush1.bf16.msra.mxu1 %v5627_v8 }
 0x2f3   :  { %4104 = vmatprep.subr.bf16.mxu0 %v5632_v16  ;;  %4145 = vmatprep.subr.bf16.mxu1 %v5635_v9 }
 0x2f6   :  { %4105 = vmatpush1.bf16.msra.mxu0 %v5630_v10  ;;  %4146 = vmatpush1.bf16.msra.mxu1 %v5633_v11 }
 0x2f7   :  { %4106 = vmatprep.subr.bf16.mxu0 %v5638_v12  ;;  %4147 = vmatprep.subr.bf16.mxu1 %v5641_v13 }
 0x2fa   :  { %4107 = vmatpush1.bf16.msra.mxu0 %v5636_v14  ;;  %4148 = vmatpush1.bf16.msra.mxu1 %v5639_v17 }
 0x2fb   :  { %4108 = vmatprep.subr.bf16.mxu0 %v5644_v18  ;;  %4149 = vmatprep.subr.bf16.mxu1 %v5647_v19 }
 0x2fe   :  { %4109 = vmatpush1.bf16.msra.mxu0 %v5642_v22  ;;  %4150 = vmatpush1.bf16.msra.mxu1 %v5645_v25  ;;  %v5696_v22 = vld [vmem:[#allocation13 + $0x190] ss:$28 sps:$4 sm:$0xff]  }
 0x2ff   :  { %4110 = vmatprep.subr.bf16.mxu0 %v5650_v26  ;;  %4151 = vmatprep.subr.bf16.mxu1 %v5653_v27  ;;  %v5699_v25 = vld [vmem:[#allocation13 + $0x510] ss:$28 sps:$4 sm:$0xff]  }
 0x302   :  { %4111 = vmatpush2.bf16.msra.mxu0 %v5648_v20  ;;  %4152 = vmatpush2.bf16.msra.mxu1 %v5651_v21  ;;  %v5704_v20 = vld [vmem:[#allocation13 + $0x15c] ss:$28 sps:$4 sm:$0xff]  }
 0x303   :  { %4112 = vmatprep.subr.bf16.mxu0 %v5656_v23  ;;  %4153 = vmatprep.subr.bf16.mxu1 %v5659_v28  ;;  %v5707_v21 = vld [vmem:[#allocation13 + $0x4dc] ss:$28 sps:$4 sm:$0xff]  }
 0x304   :  { %v5702_v23 = vld [vmem:[#allocation13 + $0x158] ss:$28 sps:$4 sm:$0xff]  }
 0x305   :  { %v5705_v28 = vld [vmem:[#allocation13 + $0x4d8] ss:$28 sps:$4 sm:$0xff]  }
 0x306   :  { %4113 = vmatpush2.bf16.msra.mxu0 %v5654_v24  ;;  %4154 = vmatpush2.bf16.msra.mxu1 %v5657_v29  ;;  %v5710_v24 = vld [vmem:[#allocation13 + $0x124] ss:$28 sps:$4 sm:$0xff]  }
 0x307   :  { %4114 = vmatprep.subr.bf16.mxu0 %v5662_v30  ;;  %4155 = vmatprep.subr.bf16.mxu1 %v5665_v31  ;;  %v5713_v29 = vld [vmem:[#allocation13 + $0x4a4] ss:$28 sps:$4 sm:$0xff]  }
 0x308   :  { %v5708_v30 = vld [vmem:[#allocation13 + $0x120] ss:$28 sps:$4 sm:$0xff]  }
 0x309   :  { %v5711_v31 = vld [vmem:[#allocation13 + $0x4a0] ss:$28 sps:$4 sm:$0xff]  }
 0x30a   :  { %4115 = vmatpush2.bf16.msra.mxu0 %v5660_v32  ;;  %4156 = vmatpush2.bf16.msra.mxu1 %v5663_v33  ;;  %v5716_v32 = vld [vmem:[#allocation13 + $0xec] ss:$28 sps:$4 sm:$0xff]  }
 0x30b   :  { %4116 = vmatprep.subr.bf16.mxu0 %v5668_v51  ;;  %4157 = vmatprep.subr.bf16.mxu1 %v5671_v36  ;;  %v5719_v33 = vld [vmem:[#allocation13 + $0x46c] ss:$28 sps:$4 sm:$0xff]  }
 0x30c   :  { %v5714_v51 = vld [vmem:[#allocation13 + $0xe8] ss:$28 sps:$4 sm:$0xff]  }
 0x30d   :  { %v5717_v36 = vld [vmem:[#allocation13 + $0x468] ss:$28 sps:$4 sm:$0xff]  }
 0x30e   :  { %4117 = vmatpush2.bf16.msra.mxu0 %v5666_v37  ;;  %4158 = vmatpush2.bf16.msra.mxu1 %v5669_v38  ;;  %v5722_v37 = vld [vmem:[#allocation13 + $0xb4] ss:$28 sps:$4 sm:$0xff]  }
 0x30f   :  { %4118 = vmatprep.subr.bf16.mxu0 %v5674_v39  ;;  %4159 = vmatprep.subr.bf16.mxu1 %v5677_v40  ;;  %v5725_v38 = vld [vmem:[#allocation13 + $0x434] ss:$28 sps:$4 sm:$0xff]  }
 0x310   :  { %v5720_v39 = vld [vmem:[#allocation13 + $0xb0] ss:$28 sps:$4 sm:$0xff]  }
 0x311   :  { %v5723_v40 = vld [vmem:[#allocation13 + $0x430] ss:$28 sps:$4 sm:$0xff]  }
 0x312   :  { %4119 = vmatpush2.bf16.msra.mxu0 %v5672_v41  ;;  %4160 = vmatpush2.bf16.msra.mxu1 %v5675_v42  ;;  %v5728_v41 = vld [vmem:[#allocation13 + $0x7c] ss:$28 sps:$4 sm:$0xff]  }
 0x313   :  { %4120 = vmatprep.subr.bf16.mxu0 %v5680_v43  ;;  %4161 = vmatprep.subr.bf16.mxu1 %v5683_v44  ;;  %v5731_v42 = vld [vmem:[#allocation13 + $0x3fc] ss:$28 sps:$4 sm:$0xff]  }
 0x314   :  { %v5726_v43 = vld [vmem:[#allocation13 + $0x78] ss:$28 sps:$4 sm:$0xff]  }
 0x315   :  { %v5729_v44 = vld [vmem:[#allocation13 + $0x3f8] ss:$28 sps:$4 sm:$0xff]  }
 0x316   :  { %4121 = vmatpush2.bf16.msra.mxu0 %v5678_v45  ;;  %4162 = vmatpush2.bf16.msra.mxu1 %v5681_v46  ;;  %v5734_v45 = vld [vmem:[#allocation13 + $0x44] ss:$28 sps:$4 sm:$0xff]  }
 0x317   :  { %4122 = vmatprep.subr.bf16.mxu0 %v5686_v48  ;;  %4163 = vmatprep.subr.bf16.mxu1 %v5689_v49  ;;  %v5737_v46 = vld [vmem:[#allocation13 + $0x3c4] ss:$28 sps:$4 sm:$0xff]  }
 0x318   :  { %v5732_v48 = vld [vmem:[#allocation13 + $0x40] ss:$28 sps:$4 sm:$0xff]  }
 0x319   :  { %v5735_v49 = vld [vmem:[#allocation13 + $0x3c0] ss:$28 sps:$4 sm:$0xff]  }
 0x31a   :  { %4123 = vmatpush2.bf16.msra.mxu0 %v5684_v50  ;;  %4164 = vmatpush2.bf16.msra.mxu1 %v5687_v52  ;;  %v5740_v50 = vld [vmem:[#allocation13 + $0xc] ss:$28 sps:$4 sm:$0xff]  }
 0x31b   :  { %4124 = vmatprep.subr.bf16.mxu0 %v5692_v53  ;;  %4165 = vmatprep.subr.bf16.mxu1 %v5695_v54  ;;  %v5743_v52 = vld [vmem:[#allocation13 + $0x38c] ss:$28 sps:$4 sm:$0xff]  }
 0x31c   :  { %v5738_v53 = vld [vmem:[#allocation13 + $0x8] ss:$28 sps:$4 sm:$0xff]  }
 0x31d   :  { %v5741_v54 = vld [vmem:[#allocation13 + $0x388] ss:$28 sps:$4 sm:$0xff]  }
 0x31e   :  { %4125 = vmatpush2.bf16.msra.mxu0 %v5690_v55  ;;  %4166 = vmatpush2.bf16.msra.mxu1 %v5693_v56  ;;  %v5746_v55 = vld [vmem:[#allocation13 + $0x354] ss:$28 sps:$4 sm:$0xff]  }
 0x31f   :  { %4176 = vmatprep.subr.bf16.mxu0 %v5698_v57  ;;  %4217 = vmatprep.subr.bf16.mxu1 %v5701_v58  ;;  %v5749_v56 = vld [vmem:[#allocation13 + $0x6d4] ss:$28 sps:$4 sm:$0xff]  }
 0x320   :  { %v5744_v57 = vld [vmem:[#allocation13 + $0x350] ss:$28 sps:$4 sm:$0xff]  }
 0x321   :  { %v5747_v58 = vld [vmem:[#allocation13 + $0x6d0] ss:$28 sps:$4 sm:$0xff]  }
 0x3a1   :  { %v2850_v6 = vpop.f32.mrf.mxu0  ;;  %v2891_v63 = vpop.f32.mrf.mxu1 }
 0x3a2   :  { %v2851_v1 = vadd.f32 %v2850_v6, %v2639_v60  ;;  %v2892_v3 = vadd.f32 %v2891_v63, %v2647_v61  ;;  %v5755_v60 = vld [vmem:[#allocation13 + $0x69c] ss:$28 sps:$4 sm:$0xff]   ;;  %v5761_v6 = vld [vmem:[#allocation13 + $0x664] ss:$28 sps:$4 sm:$0xff]  }
 0x3a3   :  { %v2852_v4 = vpop.f32.mrf.mxu0  ;;  %v2893_v35 = vpop.f32.mrf.mxu1  ;;  %v5750_v61 = vld [vmem:[#allocation13 + $0x318] ss:$28 sps:$4 sm:$0xff]   ;;  %v5756_v63 = vld [vmem:[#allocation13 + $0x2e0] ss:$28 sps:$4 sm:$0xff]  }
 0x3a4   :  { %v2853_v5 = vadd.f32 %v2852_v4, %v2643_v62  ;;  %v2894_v8 = vadd.f32 %v2893_v35, %v2651_v47  ;;  %v2898_v16 = vmax.f32 %v2851_v1, 0.0  ;;  %v2900_v9 = vmax.f32 %v2892_v3, 0.0  ;;  %v5753_v62 = vld [vmem:[#allocation13 + $0x698] ss:$28 sps:$4 sm:$0xff]   ;;  %v5758_v47 = vld [vmem:[#allocation13 + $0x2e4] ss:$28 sps:$4 sm:$0xff]  }
 0x3a5   :  { %v2854_v10 = vpop.f32.mrf.mxu0  ;;  %v2895_v11 = vpop.f32.mrf.mxu1  ;;  %v5759_v1 = vld [vmem:[#allocation13 + $0x660] ss:$28 sps:$4 sm:$0xff]   ;;  %v5764_v3 = vld [vmem:[#allocation13 + $0x2ac] ss:$28 sps:$4 sm:$0xff]  }
 0x3a6   :  { %v2899_v12 = vmax.f32 %v2853_v5, 0.0  ;;  %v2901_v13 = vmax.f32 %v2894_v8, 0.0  ;;  %v6306_v26 = vpack.c.bf16 %v2898_v16, %v2898_v16  ;;  %v6308_v27 = vpack.c.bf16 %v2900_v9, %v2900_v9  ;;  %v5767_v4 = vld [vmem:[#allocation13 + $0x62c] ss:$28 sps:$4 sm:$0xff]   ;;  %v5770_v8 = vld [vmem:[#allocation13 + $0x274] ss:$28 sps:$4 sm:$0xff]  }
 0x3a7   :  { %v2855_v14 = vpop.f32.mrf.mxu0  ;;  %v2896_v17 = vpop.f32.mrf.mxu1  ;;  %v5762_v35 = vld [vmem:[#allocation13 + $0x2a8] ss:$28 sps:$4 sm:$0xff]   ;;  %v5773_v16 = vld [vmem:[#allocation13 + $0x5f4] ss:$28 sps:$4 sm:$0xff]   ;;  %v5776_v11 = vld [vmem:[#allocation13 + $0x23c] ss:$28 sps:$4 sm:$0xff]  }
 0x3a8   :  { %v6302_v18 = vpack.c.bf16 %v2899_v12, %v2899_v12  ;;  %v6304_v19 = vpack.c.bf16 %v2901_v13, %v2901_v13  ;;  %v5765_v5 = vld [vmem:[#allocation13 + $0x628] ss:$28 sps:$4 sm:$0xff]   ;;  %v5768_v9 = vld [vmem:[#allocation13 + $0x270] ss:$28 sps:$4 sm:$0xff]   ;;  %v5779_v12 = vld [vmem:[#allocation13 + $0x5bc] ss:$28 sps:$4 sm:$0xff]  }
 0x3a9   :  { %v5771_v10 = vld [vmem:[#allocation13 + $0x5f0] ss:$28 sps:$4 sm:$0xff]   ;;  %v5774_v13 = vld [vmem:[#allocation13 + $0x238] ss:$28 sps:$4 sm:$0xff]   ;;  %v5782_v17 = vld [vmem:[#allocation13 + $0x204] ss:$28 sps:$4 sm:$0xff]  }
 0x3aa   :  { %4126 = vmatprep.mubr.bf16.mxu0 %v6302_v18  ;;  %4167 = vmatprep.mubr.bf16.mxu1 %v6304_v19  ;;  %v5777_v14 = vld [vmem:[#allocation13 + $0x5b8] ss:$28 sps:$4 sm:$0xff]  }
 0x3ab   :  { %4127 = vmatmul.mubr.bf16.vlgmr.msra.gmra.mxu0 %v6306_v26  ;;  %4168 = vmatmul.mubr.bf16.vlgmr.msra.gmra.mxu1 %v6308_v27 }
 0x3ac   :  { %4177 = vmatpush1.bf16.msra.mxu0 %v5696_v22  ;;  %4218 = vmatpush1.bf16.msra.mxu1 %v5699_v25  ;;  %v5785_v22 = vld [vmem:[#allocation13 + $0x584] ss:$28 sps:$4 sm:$0xff]  }
 0x3ad   :  { %4208 = vmatprep.mubr.bf16.mxu0 %v6302_v18  ;;  %4249 = vmatprep.mubr.bf16.mxu1 %v6304_v19  ;;  %v5780_v25 = vld [vmem:[#allocation13 + $0x200] ss:$28 sps:$4 sm:$0xff]  }
 0x3ae   :  { %4178 = vmatprep.subr.bf16.mxu0 %v5704_v20  ;;  %4219 = vmatprep.subr.bf16.mxu1 %v5707_v21  ;;  %v5783_v20 = vld [vmem:[#allocation13 + $0x580] ss:$28 sps:$4 sm:$0xff]   ;;  %v5788_v21 = vld [vmem:[#allocation13 + $0x1cc] ss:$28 sps:$4 sm:$0xff]  }
 0x3b0   :  { %4179 = vmatpush1.bf16.msra.mxu0 %v5702_v23  ;;  %4220 = vmatpush1.bf16.msra.mxu1 %v5705_v28  ;;  %v5791_v23 = vld [vmem:[#allocation13 + $0x54c] ss:$28 sps:$4 sm:$0xff]  }
 0x3b1   :  { %4180 = vmatprep.subr.bf16.mxu0 %v5710_v24  ;;  %4221 = vmatprep.subr.bf16.mxu1 %v5713_v29  ;;  %v5786_v28 = vld [vmem:[#allocation13 + $0x1c8] ss:$28 sps:$4 sm:$0xff]   ;;  %v5794_v29 = vld [vmem:[#allocation13 + $0x19c] ss:$28 sps:$4 sm:$0xff]  }
 0x3b2   :  { %v5789_v24 = vld [vmem:[#allocation13 + $0x548] ss:$28 sps:$4 sm:$0xff]  }
 0x3b4   :  { %4181 = vmatpush1.bf16.msra.mxu0 %v5708_v30  ;;  %4222 = vmatpush1.bf16.msra.mxu1 %v5711_v31  ;;  %v5797_v30 = vld [vmem:[#allocation13 + $0x51c] ss:$28 sps:$4 sm:$0xff]  }
 0x3b5   :  { %4182 = vmatprep.subr.bf16.mxu0 %v5716_v32  ;;  %4223 = vmatprep.subr.bf16.mxu1 %v5719_v33  ;;  %v5792_v31 = vld [vmem:[#allocation13 + $0x198] ss:$28 sps:$4 sm:$0xff]   ;;  %v5800_v33 = vld [vmem:[#allocation13 + $0x164] ss:$28 sps:$4 sm:$0xff]  }
 0x3b6   :  { %v5795_v32 = vld [vmem:[#allocation13 + $0x518] ss:$28 sps:$4 sm:$0xff]  }
 0x3b8   :  { %4183 = vmatpush1.bf16.msra.mxu0 %v5714_v51  ;;  %4224 = vmatpush1.bf16.msra.mxu1 %v5717_v36  ;;  %v5803_v51 = vld [vmem:[#allocation13 + $0x4e4] ss:$28 sps:$4 sm:$0xff]  }
 0x3b9   :  { %4184 = vmatprep.subr.bf16.mxu0 %v5722_v37  ;;  %4225 = vmatprep.subr.bf16.mxu1 %v5725_v38  ;;  %v5798_v36 = vld [vmem:[#allocation13 + $0x160] ss:$28 sps:$4 sm:$0xff]   ;;  %v5806_v38 = vld [vmem:[#allocation13 + $0x12c] ss:$28 sps:$4 sm:$0xff]  }
 0x3ba   :  { %v5801_v37 = vld [vmem:[#allocation13 + $0x4e0] ss:$28 sps:$4 sm:$0xff]  }
 0x3bc   :  { %4185 = vmatpush1.bf16.msra.mxu0 %v5720_v39  ;;  %4226 = vmatpush1.bf16.msra.mxu1 %v5723_v40  ;;  %v5809_v39 = vld [vmem:[#allocation13 + $0x4ac] ss:$28 sps:$4 sm:$0xff]  }
 0x3bd   :  { %4186 = vmatprep.subr.bf16.mxu0 %v5728_v41  ;;  %4227 = vmatprep.subr.bf16.mxu1 %v5731_v42  ;;  %v5804_v40 = vld [vmem:[#allocation13 + $0x128] ss:$28 sps:$4 sm:$0xff]   ;;  %v5812_v42 = vld [vmem:[#allocation13 + $0xf4] ss:$28 sps:$4 sm:$0xff]  }
 0x3be   :  { %v5807_v41 = vld [vmem:[#allocation13 + $0x4a8] ss:$28 sps:$4 sm:$0xff]  }
 0x3c0   :  { %4187 = vmatpush1.bf16.msra.mxu0 %v5726_v43  ;;  %4228 = vmatpush1.bf16.msra.mxu1 %v5729_v44  ;;  %v5815_v43 = vld [vmem:[#allocation13 + $0x474] ss:$28 sps:$4 sm:$0xff]  }
 0x3c1   :  { %4188 = vmatprep.subr.bf16.mxu0 %v5734_v45  ;;  %4229 = vmatprep.subr.bf16.mxu1 %v5737_v46  ;;  %v5810_v44 = vld [vmem:[#allocation13 + $0xf0] ss:$28 sps:$4 sm:$0xff]   ;;  %v5818_v46 = vld [vmem:[#allocation13 + $0xbc] ss:$28 sps:$4 sm:$0xff]  }
 0x3c2   :  { %v5813_v45 = vld [vmem:[#allocation13 + $0x470] ss:$28 sps:$4 sm:$0xff]  }
 0x3c4   :  { %4189 = vmatpush1.bf16.msra.mxu0 %v5732_v48  ;;  %4230 = vmatpush1.bf16.msra.mxu1 %v5735_v49  ;;  %v5821_v48 = vld [vmem:[#allocation13 + $0x43c] ss:$28 sps:$4 sm:$0xff]  }
 0x3c5   :  { %4190 = vmatprep.subr.bf16.mxu0 %v5740_v50  ;;  %4231 = vmatprep.subr.bf16.mxu1 %v5743_v52  ;;  %v5816_v49 = vld [vmem:[#allocation13 + $0xb8] ss:$28 sps:$4 sm:$0xff]   ;;  %v5824_v52 = vld [vmem:[#allocation13 + $0x84] ss:$28 sps:$4 sm:$0xff]  }
 0x3c6   :  { %v5819_v50 = vld [vmem:[#allocation13 + $0x438] ss:$28 sps:$4 sm:$0xff]  }
 0x3c8   :  { %4191 = vmatpush1.bf16.msra.mxu0 %v5738_v53  ;;  %4232 = vmatpush1.bf16.msra.mxu1 %v5741_v54  ;;  %v5827_v53 = vld [vmem:[#allocation13 + $0x404] ss:$28 sps:$4 sm:$0xff]  }
 0x3c9   :  { %4192 = vmatprep.subr.bf16.mxu0 %v5746_v55  ;;  %4233 = vmatprep.subr.bf16.mxu1 %v5749_v56  ;;  %v5822_v54 = vld [vmem:[#allocation13 + $0x80] ss:$28 sps:$4 sm:$0xff]   ;;  %v5830_v56 = vld [vmem:[#allocation13 + $0x4c] ss:$28 sps:$4 sm:$0xff]  }
 0x3ca   :  { %v5825_v55 = vld [vmem:[#allocation13 + $0x400] ss:$28 sps:$4 sm:$0xff]  }
 0x3cc   :  { %4193 = vmatpush2.bf16.msra.mxu0 %v5744_v57  ;;  %4234 = vmatpush2.bf16.msra.mxu1 %v5747_v58  ;;  %v5833_v57 = vld [vmem:[#allocation13 + $0x3cc] ss:$28 sps:$4 sm:$0xff]  }
 0x3cd   :  { %4194 = vmatprep.subr.bf16.mxu0 %v5752_v59  ;;  %4235 = vmatprep.subr.bf16.mxu1 %v5755_v60  ;;  %v5828_v58 = vld [vmem:[#allocation13 + $0x48] ss:$28 sps:$4 sm:$0xff]   ;;  %v5836_v60 = vld [vmem:[#allocation13 + $0x14] ss:$28 sps:$4 sm:$0xff]  }
 0x3ce   :  { %v5831_v59 = vld [vmem:[#allocation13 + $0x3c8] ss:$28 sps:$4 sm:$0xff]  }
 0x3d0   :  { %4195 = vmatpush2.bf16.msra.mxu0 %v5750_v61  ;;  %4236 = vmatpush2.bf16.msra.mxu1 %v5753_v62  ;;  %v5839_v61 = vld [vmem:[#allocation13 + $0x394] ss:$28 sps:$4 sm:$0xff]  }
 0x3d1   :  { %4196 = vmatprep.subr.bf16.mxu0 %v5758_v47  ;;  %4237 = vmatprep.subr.bf16.mxu1 %v5761_v6  ;;  %v5834_v62 = vld [vmem:[#allocation13 + $0x10] ss:$28 sps:$4 sm:$0xff]   ;;  %v5842_v6 = vld [vmem:[#allocation13 + $0x35c] ss:$28 sps:$4 sm:$0xff]  }
 0x3d2   :  { %v5837_v47 = vld [vmem:[#allocation13 + $0x390] ss:$28 sps:$4 sm:$0xff]  }
 0x3d4   :  { %4197 = vmatpush2.bf16.msra.mxu0 %v5756_v63  ;;  %4238 = vmatpush2.bf16.msra.mxu1 %v5759_v1  ;;  %v5845_v63 = vld [vmem:[#allocation13 + $0x6dc] ss:$28 sps:$4 sm:$0xff]  }
 0x3d5   :  { %4198 = vmatprep.subr.bf16.mxu0 %v5764_v3  ;;  %4239 = vmatprep.subr.bf16.mxu1 %v5767_v4  ;;  %v5840_v1 = vld [vmem:[#allocation13 + $0x358] ss:$28 sps:$4 sm:$0xff]   ;;  %v5848_v4 = vld [vmem:[#allocation13 + $0x324] ss:$28 sps:$4 sm:$0xff]  }
 0x3d6   :  { %v5843_v3 = vld [vmem:[#allocation13 + $0x6d8] ss:$28 sps:$4 sm:$0xff]  }
 0x3d8   :  { %4199 = vmatpush2.bf16.msra.mxu0 %v5762_v35  ;;  %4240 = vmatpush2.bf16.msra.mxu1 %v5765_v5  ;;  %v5851_v35 = vld [vmem:[#allocation13 + $0x6a4] ss:$28 sps:$4 sm:$0xff]  }
 0x3d9   :  { %4200 = vmatprep.subr.bf16.mxu0 %v5770_v8  ;;  %4241 = vmatprep.subr.bf16.mxu1 %v5773_v16  ;;  %v5846_v5 = vld [vmem:[#allocation13 + $0x320] ss:$28 sps:$4 sm:$0xff]   ;;  %v5854_v16 = vld [vmem:[#allocation13 + $0x2ec] ss:$28 sps:$4 sm:$0xff]  }
 0x3da   :  { %v5849_v8 = vld [vmem:[#allocation13 + $0x6a0] ss:$28 sps:$4 sm:$0xff]  }
 0x3dc   :  { %4201 = vmatpush2.bf16.msra.mxu0 %v5768_v9  ;;  %4242 = vmatpush2.bf16.msra.mxu1 %v5771_v10  ;;  %v5857_v9 = vld [vmem:[#allocation13 + $0x66c] ss:$28 sps:$4 sm:$0xff]  }
 0x3dd   :  { %4202 = vmatprep.subr.bf16.mxu0 %v5776_v11  ;;  %4243 = vmatprep.subr.bf16.mxu1 %v5779_v12  ;;  %v5852_v10 = vld [vmem:[#allocation13 + $0x2e8] ss:$28 sps:$4 sm:$0xff]   ;;  %v5860_v12 = vld [vmem:[#allocation13 + $0x2b4] ss:$28 sps:$4 sm:$0xff]  }
 0x3de   :  { %v5855_v11 = vld [vmem:[#allocation13 + $0x668] ss:$28 sps:$4 sm:$0xff]  }
 0x3e0   :  { %4203 = vmatpush2.bf16.msra.mxu0 %v5774_v13  ;;  %4244 = vmatpush2.bf16.msra.mxu1 %v5777_v14  ;;  %v5863_v13 = vld [vmem:[#allocation13 + $0x634] ss:$28 sps:$4 sm:$0xff]  }
 0x3e1   :  { %4204 = vmatprep.subr.bf16.mxu0 %v5782_v17  ;;  %4245 = vmatprep.subr.bf16.mxu1 %v5785_v22  ;;  %v5858_v14 = vld [vmem:[#allocation13 + $0x2b0] ss:$28 sps:$4 sm:$0xff]   ;;  %v5866_v22 = vld [vmem:[#allocation13 + $0x27c] ss:$28 sps:$4 sm:$0xff]  }
 0x3e2   :  { %v5861_v17 = vld [vmem:[#allocation13 + $0x630] ss:$28 sps:$4 sm:$0xff]  }
 0x3e4   :  { %4205 = vmatpush2.bf16.msra.mxu0 %v5780_v25  ;;  %4246 = vmatpush2.bf16.msra.mxu1 %v5783_v20  ;;  %v5869_v25 = vld [vmem:[#allocation13 + $0x5fc] ss:$28 sps:$4 sm:$0xff]  }
 0x3e5   :  { %4206 = vmatprep.subr.bf16.mxu0 %v5788_v21  ;;  %4247 = vmatprep.subr.bf16.mxu1 %v5791_v23  ;;  %v5864_v20 = vld [vmem:[#allocation13 + $0x278] ss:$28 sps:$4 sm:$0xff]   ;;  %v5872_v23 = vld [vmem:[#allocation13 + $0x244] ss:$28 sps:$4 sm:$0xff]  }
 0x3e6   :  { %v5867_v21 = vld [vmem:[#allocation13 + $0x5f8] ss:$28 sps:$4 sm:$0xff]  }
 0x3e8   :  { %4207 = vmatpush2.bf16.msra.mxu0 %v5786_v28  ;;  %4248 = vmatpush2.bf16.msra.mxu1 %v5789_v24  ;;  %v5875_v28 = vld [vmem:[#allocation13 + $0x5c4] ss:$28 sps:$4 sm:$0xff]  }
 0x3e9   :  { %4258 = vmatprep.subr.bf16.mxu0 %v5794_v29  ;;  %4299 = vmatprep.subr.bf16.mxu1 %v5797_v30  ;;  %v5870_v24 = vld [vmem:[#allocation13 + $0x240] ss:$28 sps:$4 sm:$0xff]   ;;  %v5878_v30 = vld [vmem:[#allocation13 + $0x20c] ss:$28 sps:$4 sm:$0xff]  }
 0x3ea   :  { %v5873_v29 = vld [vmem:[#allocation13 + $0x5c0] ss:$28 sps:$4 sm:$0xff]  }
 0x3eb   :  { %4209 = vmatmul.mubr.bf16.vlgmr.msra.gmra.mxu0 %v6306_v26  ;;  %4250 = vmatmul.mubr.bf16.vlgmr.msra.gmra.mxu1 %v6308_v27 }
 0x3ec   :  { %4259 = vmatpush1.bf16.msra.mxu0 %v5792_v31  ;;  %4290 = vmatprep.mubr.bf16.mxu0 %v6302_v18  ;;  %v5881_v31 = vld [vmem:[#allocation13 + $0x58c] ss:$28 sps:$4 sm:$0xff]  }
 0x3ed   :  { %4300 = vmatpush1.bf16.msra.mxu1 %v5795_v32  ;;  %4331 = vmatprep.mubr.bf16.mxu1 %v6304_v19  ;;  %v5876_v32 = vld [vmem:[#allocation13 + $0x208] ss:$28 sps:$4 sm:$0xff]  }
 0x3ee   :  { %4260 = vmatprep.subr.bf16.mxu0 %v5800_v33  ;;  %4301 = vmatprep.subr.bf16.mxu1 %v5803_v51  ;;  %v5879_v33 = vld [vmem:[#allocation13 + $0x588] ss:$28 sps:$4 sm:$0xff]   ;;  %v5884_v51 = vld [vmem:[#allocation13 + $0x1d4] ss:$28 sps:$4 sm:$0xff]  }
 0x3f0   :  { %4261 = vmatpush1.bf16.msra.mxu0 %v5798_v36  ;;  %v5887_v36 = vld [vmem:[#allocation13 + $0x554] ss:$28 sps:$4 sm:$0xff]  }
 0x3f1   :  { %4302 = vmatpush1.bf16.msra.mxu1 %v5801_v37  ;;  %4262 = vmatprep.subr.bf16.mxu0 %v5806_v38  ;;  %v5882_v37 = vld [vmem:[#allocation13 + $0x1d0] ss:$28 sps:$4 sm:$0xff]  }
 0x3f2   :  { %4303 = vmatprep.subr.bf16.mxu1 %v5809_v39  ;;  %v5885_v38 = vld [vmem:[#allocation13 + $0x550] ss:$28 sps:$4 sm:$0xff]   ;;  %v5888_v39 = vld [vmem:[#allocation13 + $0x360] ss:$28 sps:$4 sm:$0xff]  }
 0x3f4   :  { %4263 = vmatpush1.bf16.msra.mxu0 %v5804_v40  ;;  %v5889_v40 = vld [vmem:[#allocation13 + $0x6e0] ss:$28 sps:$4 sm:$0xff]  }
 0x3f5   :  { %4304 = vmatpush1.bf16.msra.mxu1 %v5807_v41  ;;  %4264 = vmatprep.subr.bf16.mxu0 %v5812_v42  ;;  %v5890_v41 = vld [vmem:[#allocation13 + $0x1a0] ss:$28 sps:$4 sm:$0xff]  }
 0x3f6   :  { %4305 = vmatprep.subr.bf16.mxu1 %v5815_v43  ;;  %v5891_v42 = vld [vmem:[#allocation13 + $0x520] ss:$28 sps:$4 sm:$0xff]   ;;  %v5892_v43 = vld [vmem:[#allocation13 + $0x328] ss:$28 sps:$4 sm:$0xff]  }
 0x3f8   :  { %4265 = vmatpush1.bf16.msra.mxu0 %v5810_v44  ;;  %v5893_v44 = vld [vmem:[#allocation13 + $0x6a8] ss:$28 sps:$4 sm:$0xff]  }
 0x3f9   :  { %4306 = vmatpush1.bf16.msra.mxu1 %v5813_v45  ;;  %4266 = vmatprep.subr.bf16.mxu0 %v5818_v46  ;;  %v5894_v45 = vld [vmem:[#allocation13 + $0x168] ss:$28 sps:$4 sm:$0xff]  }
 0x3fa   :  { %4307 = vmatprep.subr.bf16.mxu1 %v5821_v48  ;;  %v5895_v46 = vld [vmem:[#allocation13 + $0x4e8] ss:$28 sps:$4 sm:$0xff]   ;;  %v5896_v48 = vld [vmem:[#allocation13 + $0x2f0] ss:$28 sps:$4 sm:$0xff]  }
 0x3fc   :  { %4267 = vmatpush1.bf16.msra.mxu0 %v5816_v49  ;;  %v5897_v49 = vld [vmem:[#allocation13 + $0x670] ss:$28 sps:$4 sm:$0xff]  }
 0x3fd   :  { %4308 = vmatpush1.bf16.msra.mxu1 %v5819_v50  ;;  %4268 = vmatprep.subr.bf16.mxu0 %v5824_v52  ;;  %v5898_v50 = vld [vmem:[#allocation13 + $0x130] ss:$28 sps:$4 sm:$0xff]  }
 0x3fe   :  { %4309 = vmatprep.subr.bf16.mxu1 %v5827_v53  ;;  %v5899_v52 = vld [vmem:[#allocation13 + $0x4b0] ss:$28 sps:$4 sm:$0xff]   ;;  %v5900_v53 = vld [vmem:[#allocation13 + $0x2b8] ss:$28 sps:$4 sm:$0xff]  }
 0x400   :  { %4269 = vmatpush1.bf16.msra.mxu0 %v5822_v54  ;;  %v5901_v54 = vld [vmem:[#allocation13 + $0x638] ss:$28 sps:$4 sm:$0xff]  }
 0x401   :  { %4310 = vmatpush1.bf16.msra.mxu1 %v5825_v55  ;;  %4270 = vmatprep.subr.bf16.mxu0 %v5830_v56  ;;  %v5902_v55 = vld [vmem:[#allocation13 + $0xf8] ss:$28 sps:$4 sm:$0xff]   ;;  %v5904_v56 = vld [vmem:[#allocation13 + $0x280] ss:$28 sps:$4 sm:$0xff]  }
 0x402   :  { %4311 = vmatprep.subr.bf16.mxu1 %v5833_v57  ;;  %v5905_v57 = vld [vmem:[#allocation13 + $0x600] ss:$28 sps:$4 sm:$0xff]  }
 0x404   :  { %4271 = vmatpush1.bf16.msra.mxu0 %v5828_v58  ;;  %v5907_v58 = vld [vmem:[#allocation13 + $0x440] ss:$28 sps:$4 sm:$0xff]  }
 0x405   :  { %4312 = vmatpush1.bf16.msra.mxu1 %v5831_v59  ;;  %4272 = vmatprep.subr.bf16.mxu0 %v5836_v60  ;;  %v5908_v59 = vld [vmem:[#allocation13 + $0x248] ss:$28 sps:$4 sm:$0xff]  }
 0x406   :  { %4313 = vmatprep.subr.bf16.mxu1 %v5839_v61  ;;  %v5909_v60 = vld [vmem:[#allocation13 + $0x5c8] ss:$28 sps:$4 sm:$0xff]  }
 0x407   :  { %v5910_v61 = vld [vmem:[#allocation13 + $0x88] ss:$28 sps:$4 sm:$0xff]  }
 0x408   :  { %4273 = vmatpush1.bf16.msra.mxu0 %v5834_v62  ;;  %v5911_v62 = vld [vmem:[#allocation13 + $0x408] ss:$28 sps:$4 sm:$0xff]  }
 0x409   :  { %4314 = vmatpush1.bf16.msra.mxu1 %v5837_v47  ;;  %4274 = vmatprep.subr.bf16.mxu0 %v5842_v6  ;;  %v5912_v47 = vld [vmem:[#allocation13 + $0x210] ss:$28 sps:$4 sm:$0xff]  }
 0x40a   :  { %4315 = vmatprep.subr.bf16.mxu1 %v5845_v63  ;;  %v5913_v6 = vld [vmem:[#allocation13 + $0x590] ss:$28 sps:$4 sm:$0xff]  }
 0x40b   :  { %v5914_v63 = vld [vmem:[#allocation13 + $0x50] ss:$28 sps:$4 sm:$0xff]  }
 0x40c   :  { %4275 = vmatpush2.bf16.msra.mxu0 %v5840_v1  ;;  %v5915_v1 = vld [vmem:[#allocation13 + $0x3d0] ss:$28 sps:$4 sm:$0xff]  }
 0x40d   :  { %4316 = vmatpush2.bf16.msra.mxu1 %v5843_v3  ;;  %4276 = vmatprep.subr.bf16.mxu0 %v5848_v4  ;;  %v5916_v3 = vld [vmem:[#allocation13 + $0x1d8] ss:$28 sps:$4 sm:$0xff]  }
 0x40e   :  { %4317 = vmatprep.subr.bf16.mxu1 %v5851_v35  ;;  %v5917_v4 = vld [vmem:[#allocation13 + $0x558] ss:$28 sps:$4 sm:$0xff]  }
 0x40f   :  { %v5918_v35 = vld [vmem:[#allocation13 + $0x18] ss:$28 sps:$4 sm:$0xff]  }
 0x410   :  { %4277 = vmatpush2.bf16.msra.mxu0 %v5846_v5  ;;  %v5919_v5 = vld [vmem:[#allocation13 + $0x398] ss:$28 sps:$4 sm:$0xff]  }
 0x411   :  { %4318 = vmatpush2.bf16.msra.mxu1 %v5849_v8  ;;  %4278 = vmatprep.subr.bf16.mxu0 %v5854_v16  ;;  %v6329_v8 = vld [vmem:[%s6360_s9] sm:$0xff]  ;;  %s6143_s9 = smov [#allocation15]  }
 0x412   :  { %4319 = vmatprep.subr.bf16.mxu1 %v5857_v9  ;;  %v2910_v16 = vrot.slane %v6329_v8, %v6269_v0  ;;  %v2914_v9 = vrot.slane %v6329_v8, %v6275_v2  ;;  %s4478_s16 = sshll.u32 %s6143_s9, 4  ;;  %s4479_s16 = int_to_ptr.vmem [resolvable:$true] %s4478_s16 }
 0x413   :  { %s6077_s4 = scalar_lea.vmem %s4479_s16, 256  ;;  %p6082_p8 = scmp.lt.s32.totalorder %s4479_s16, %s4479_s16 }
 0x414   :  { %4279 = vmatpush2.bf16.msra.mxu0 %v5852_v10  ;;  %p6078_p7 = scmp.ne.s32.totalorder %s4479_s16, %s6077_s4  ;;  %p6083_p9 = scmp.lt.s32.totalorder %s6077_s4, %s6077_s4 }
 0x415   :  { %4320 = vmatpush2.bf16.msra.mxu1 %v5855_v11  ;;  %4280 = vmatprep.subr.bf16.mxu0 %v5860_v12 }
 0x416   :  { %4321 = vmatprep.subr.bf16.mxu1 %v5863_v13  ;;  %p6084_p10 = por %p6083_p9, %p6082_p8 }
 0x418   :  { %4281 = vmatpush2.bf16.msra.mxu0 %v5858_v14  ;;  %p6085_p11 = pnand %p6084_p10, %p6078_p7 }
 0x419   :  { %4322 = vmatpush2.bf16.msra.mxu1 %v5861_v17  ;;  %4282 = vmatprep.subr.bf16.mxu0 %v5866_v22 }
 0x41a   :  { %4323 = vmatprep.subr.bf16.mxu1 %v5869_v25 }
 0x41c   :  { %4283 = vmatpush2.bf16.msra.mxu0 %v5864_v20 }
 0x41d   :  { %4324 = vmatpush2.bf16.msra.mxu1 %v5867_v21  ;;  %4284 = vmatprep.subr.bf16.mxu0 %v5872_v23 }
 0x41e   :  { %4325 = vmatprep.subr.bf16.mxu1 %v5875_v28 }
 0x420   :  { %4285 = vmatpush2.bf16.msra.mxu0 %v5870_v24 }
 0x421   :  { %4326 = vmatpush2.bf16.msra.mxu1 %v5873_v29  ;;  %4286 = vmatprep.subr.bf16.mxu0 %v5878_v30 }
 0x422   :  { %4327 = vmatprep.subr.bf16.mxu1 %v5881_v31 }
 0x424   :  { %4287 = vmatpush2.bf16.msra.mxu0 %v5876_v32 }
 0x425   :  { %4328 = vmatpush2.bf16.msra.mxu1 %v5879_v33  ;;  %4288 = vmatprep.subr.bf16.mxu0 %v5884_v51 }
 0x426   :  { %4329 = vmatprep.subr.bf16.mxu1 %v5887_v36 }
 0x428   :  { %4289 = vmatpush2.bf16.msra.mxu0 %v5882_v37 }
 0x429   :  { %4330 = vmatpush2.bf16.msra.mxu1 %v5885_v38  ;;  %5053 = vmatprep.subr.bf16.mxu0 %v5888_v39 }
 0x42a   :  { %5075 = vmatprep.subr.bf16.mxu1 %v5889_v40 }
 0x42b   :  { %4291 = vmatmul.mubr.bf16.vlgmr.msra.gmra.mxu0 %v6306_v26 }
 0x42c   :  { %4332 = vmatmul.mubr.bf16.vlgmr.msra.gmra.mxu1 %v6308_v27  ;;  %5054 = vmatpush3.bf16.msra.mxu0 %v5890_v41 }
 0x42d   :  { %4372 = vmatprep.mubr.bf16.mxu0 %v6302_v18  ;;  %5076 = vmatpush3.bf16.msra.mxu1 %v5891_v42  ;;  %v5903_v18 = vld [vmem:[#allocation13 + $0x478] ss:$28 sps:$4 sm:$0xff]  }
 0x42e   :  { %4412 = vmatprep.mubr.bf16.mxu1 %v6304_v19  ;;  %5055 = vmatprep.subr.bf16.mxu0 %v5892_v43  ;;  %v5906_v19 = vld [vmem:[#allocation13 + $0xc0] ss:$28 sps:$4 sm:$0xff]  }
 0x42f   :  { %5077 = vmatprep.subr.bf16.mxu1 %v5893_v44 }
 0x430   :  { %5056 = vmatpush3.bf16.msra.mxu0 %v5894_v45 }
 0x431   :  { %5078 = vmatpush3.bf16.msra.mxu1 %v5895_v46  ;;  %5057 = vmatprep.subr.bf16.mxu0 %v5896_v48 }
 0x432   :  { %5079 = vmatprep.subr.bf16.mxu1 %v5897_v49 }
 0x434   :  { %5058 = vmatpush3.bf16.msra.mxu0 %v5898_v50 }
 0x435   :  { %5080 = vmatpush3.bf16.msra.mxu1 %v5899_v52  ;;  %5059 = vmatprep.subr.bf16.mxu0 %v5900_v53 }
 0x436   :  { %5081 = vmatprep.subr.bf16.mxu1 %v5901_v54 }
 0x438   :  { %5060 = vmatpush3.bf16.msra.mxu0 %v5902_v55 }
 0x439   :  { %5082 = vmatpush3.bf16.msra.mxu1 %v5903_v18  ;;  %5061 = vmatprep.subr.bf16.mxu0 %v5904_v56 }
 0x43a   :  { %5083 = vmatprep.subr.bf16.mxu1 %v5905_v57 }
 0x43c   :  { %5062 = vmatpush3.bf16.msra.mxu0 %v5906_v19 }
 0x43d   :  { %5084 = vmatpush3.bf16.msra.mxu1 %v5907_v58  ;;  %5063 = vmatprep.subr.bf16.mxu0 %v5908_v59 }
 0x43e   :  { %5085 = vmatprep.subr.bf16.mxu1 %v5909_v60 }
 0x440   :  { %5064 = vmatpush3.bf16.msra.mxu0 %v5910_v61 }
 0x441   :  { %5086 = vmatpush3.bf16.msra.mxu1 %v5911_v62  ;;  %5065 = vmatprep.subr.bf16.mxu0 %v5912_v47 }
 0x442   :  { %5087 = vmatprep.subr.bf16.mxu1 %v5913_v6 }
 0x444   :  { %5066 = vmatpush3.bf16.msra.mxu0 %v5914_v63 }
 0x445   :  { %5088 = vmatpush3.bf16.msra.mxu1 %v5915_v1  ;;  %5067 = vmatprep.subr.bf16.mxu0 %v5916_v3 }
 0x446   :  { %5089 = vmatprep.subr.bf16.mxu1 %v5917_v4 }
 0x448   :  { %5068 = vmatpush3.bf16.msra.mxu0 %v5918_v35 }
 0x449   :  { %5090 = vmatpush3.bf16.msra.mxu1 %v5919_v5 }
 0x44b   :  { %4373 = vmatmul.mubr.bf16.vlgmr.msra.gmra.mxu0 %v6306_v26 }
 0x44c   :  { %4413 = vmatmul.mubr.bf16.vlgmr.msra.gmra.mxu1 %v6308_v27 }
 0x46b   :  { %v4128_v10 = vpop.f32.mrf.mxu0  ;;  %v4169_v11 = vpop.f32.mrf.mxu1 }
 0x46c   :  { %v4129_v12 = vadd.f32 %v4128_v10, %v2910_v16 }
 0x46d   :  { %v4130_v13 = vpop.f32.mrf.mxu0  ;;  %v4171_v14 = vpop.f32.mrf.mxu1 }
 0x46e   :  { %v4170_v17 = vadd.f32 %v4169_v11, %v4129_v12  ;;  %v4131_v26 = vadd.f32 %v4130_v13, %v2914_v9 }
 0x46f   :  { %v4132_v22 = vpop.f32.mrf.mxu0  ;;  %v4173_v27 = vpop.f32.mrf.mxu1 }
 0x470   :  { %v4172_v25 = vadd.f32 %v4171_v14, %v4131_v26  ;;  %5922 = vtanh.f32 %v4170_v17 }
 0x471   :  { %v4133_v20 = vpop.f32.mrf.mxu0  ;;  %v4174_v21 = vpop.f32.mrf.mxu1 }
 0x472   :  { %5924 = vtanh.f32 %v4172_v25 }
 0x47d   :  { %v5923_v23 = vpop.eup %5922 }
 0x47f   :  { %v5925_v28 = vpop.eup %5924 }
 0x480   :  { %v5049_v0 = vpack.c.bf16 %v5925_v28, %v5923_v23 }
 0x482   :  { %4456 = vst [vmem:[#allocation14] sm:$0xff] %v5049_v0 }
 0x483   :  { %6088 = shalt.err (!%p6085_p11)
}
 0x484   :  { %4481 = dma.vmem_to_hbm [thread:$0]  %s4479_s16, 256, %s6362_s11, [#allocation16]   ;;  %v2918_v2 = vrot.slane %v6329_v8, %v6285_v7  ;;  %v2922_v24 = vrot.slane %v6329_v8, %v6288_v34  ;;  %v2925_v34 = vsub.s32 4, %v6266_v15  ;;  %v2929_v44 = vsub.s32 5, %v6266_v15 }
 0x485   :  { %v2933_v62 = vsub.s32 6, %v6266_v15  ;;  %s6144_s11 = smov [#allocation14]  }
 0x486   :  { %v2926_v45 = vrot.slane %v6329_v8, %v2925_v34  ;;  %v2930_v46 = vrot.slane %v6329_v8, %v2929_v44  ;;  %s4468_s19 = sshll.u32 %s6144_s11, 4  ;;  %s4469_s19 = int_to_ptr.vmem [resolvable:$true] %s4468_s19 }
 0x487   :  { %v2934_v63 = vrot.slane %v6329_v8, %v2933_v62  ;;  %s6097_s20 = scalar_lea.vmem %s4469_s19, 448  ;;  %p6102_p13 = scmp.lt.s32.totalorder %s4469_s19, %s4469_s19 }
 0x488   :  { %p6098_p12 = scmp.ne.s32.totalorder %s4469_s19, %s6097_s20  ;;  %p6103_p0 = scmp.lt.s32.totalorder %s6097_s20, %s6097_s20 }
 0x48a   :  { %p6104_p1 = por %p6103_p0, %p6102_p13 }
 0x48c   :  { %p6105_p2 = pnand %p6104_p1, %p6098_p12 }
 0x4ab   :  { %v4210_v29 = vpop.f32.mrf.mxu0  ;;  %v4251_v30 = vpop.f32.mrf.mxu1 }
 0x4ac   :  { %v4211_v31 = vadd.f32 %v4210_v29, %v2918_v2 }
 0x4ad   :  { %v4212_v32 = vpop.f32.mrf.mxu0  ;;  %v4253_v33 = vpop.f32.mrf.mxu1 }
 0x4ae   :  { %v4252_v51 = vadd.f32 %v4251_v30, %v4211_v31  ;;  %v4213_v36 = vadd.f32 %v4212_v32, %v2922_v24 }
 0x4af   :  { %v4214_v37 = vpop.f32.mrf.mxu0  ;;  %v4255_v38 = vpop.f32.mrf.mxu1 }
 0x4b0   :  { %v4254_v39 = vadd.f32 %v4253_v33, %v4213_v36  ;;  %5926 = vtanh.f32 %v4252_v51 }
 0x4b1   :  { %v4215_v40 = vpop.f32.mrf.mxu0  ;;  %v4256_v41 = vpop.f32.mrf.mxu1 }
 0x4b2   :  { %5928 = vtanh.f32 %v4254_v39 }
 0x4bd   :  { %v5927_v42 = vpop.eup %5926 }
 0x4bf   :  { %v5929_v43 = vpop.eup %5928 }
 0x4c0   :  { %v5050_v7 = vpack.c.bf16 %v5929_v43, %v5927_v42 }
 0x4c2   :  { %4457 = vst [vmem:[#allocation14 + $0x8] sm:$0xff] %v5050_v7 }
 0x4eb   :  { %v4292_v48 = vpop.f32.mrf.mxu0 }
 0x4ec   :  { %v4293_v49 = vadd.f32 %v4292_v48, %v2926_v45  ;;  %v4333_v50 = vpop.f32.mrf.mxu1 }
 0x4ed   :  { %v4294_v52 = vpop.f32.mrf.mxu0 }
 0x4ee   :  { %v4334_v53 = vadd.f32 %v4333_v50, %v4293_v49  ;;  %v4295_v54 = vadd.f32 %v4294_v52, %v2930_v46  ;;  %v4335_v55 = vpop.f32.mrf.mxu1 }
 0x4ef   :  { %v4296_v18 = vpop.f32.mrf.mxu0 }
 0x4f0   :  { %v4336_v56 = vadd.f32 %v4335_v55, %v4295_v54  ;;  %v4337_v57 = vpop.f32.mrf.mxu1  ;;  %5930 = vtanh.f32 %v4334_v53 }
 0x4f1   :  { %v4297_v19 = vpop.f32.mrf.mxu0 }
 0x4f2   :  { %5932 = vtanh.f32 %v4336_v56  ;;  %v4338_v58 = vpop.f32.mrf.mxu1 }
 0x4fd   :  { %v5931_v59 = vpop.eup %5930 }
 0x4ff   :  { %v5933_v60 = vpop.eup %5932 }
 0x500   :  { %v5051_v61 = vpack.c.bf16 %v5933_v60, %v5931_v59 }
 0x502   :  { %4458 = vst [vmem:[#allocation14 + $0x10] sm:$0xff] %v5051_v61 }
 0x50b   :  { %v5069_v47 = vpop.f32.mrf.mxu0 }
 0x50c   :  { %v5091_v6 = vpop.f32.mrf.mxu1 }
 0x50d   :  { %v5070_v1 = vpop.f32.mrf.mxu0 }
 0x50e   :  { %v5071_v3 = vadd.f32 %v5070_v1, %v5069_v47  ;;  %v5092_v4 = vpop.f32.mrf.mxu1 }
 0x50f   :  { %v5072_v35 = vpop.f32.mrf.mxu0  ;;  %v5093_v16 = vadd.f32 %v5092_v4, %v5091_v6 }
 0x510   :  { %v4375_v5 = vadd.f32 %v5071_v3, %v2934_v63  ;;  %v5094_v9 = vpop.f32.mrf.mxu1 }
 0x511   :  { %v5073_v10 = vpop.f32.mrf.mxu0 }
 0x512   :  { %v4415_v11 = vadd.f32 %v5093_v16, %v4375_v5  ;;  %v5095_v12 = vpop.f32.mrf.mxu1 }
 0x514   :  { %5934 = vtanh.f32 %v4415_v11 }
 0x521   :  { %v5935_v13 = vpop.eup %5934 }
 0x522   :  { %v5052_v14 = vpack.c.bf16 %v5935_v13, %v5935_v13 }
 0x524   :  { %4459 = vst [vmem:[#allocation14 + $0x18] sm:$0xf] %v5052_v14 }
 0x525   :  { %6108 = shalt.err (!%p6105_p2)
}
 0x526   :  { %4471 = dma.vmem_to_hbm [thread:$0]  %s4469_s19, 448, %s6361_s10, [#allocation4]  }
 0x527   :  { %6125 = dma.done.wait [#allocation4], 448  }
 0x528   :  { %6126 = vsyncadd [#allocation4], 4294966848 }
 0x529   :  { %6127 = dma.done.wait [#allocation16], 256  }
 0x52a   :  { %6128 = vsyncadd [#allocation16], 4294967040 }
 0x52b   :  { %4488 = vsyncpa [#allocation3], 1 }
 0x52c   :  { %4489 = vsyncpa [#allocation6], 1 }
 0x52d   :  { %4490 = vsyncpa [#allocation9], 1 }
 0x52e   :  { %4491 = vsyncpa [#allocation12], 1 }
 0x52f   :  { %4492 = vsyncpa [#allocation4], 1 }
 0x530   :  { %4493 = vsyncpa [#allocation16], 1 }

</bundles_post_ra>
